<compile_context>
chip_gen: v5e
topology: v5e:2x2
jax: 0.10.0
libtpu: 0.0.40
codegen_flags: <defaults>
</compile_context>

<pallas_src>
import functools

import numpy as np

import jax
import jax.numpy as jnp
from jax.experimental import pallas as pl
from jax.experimental.pallas import tpu as pltpu


# ---------------------------------------------------------------------------
# trace-time (numpy) constant builders
# ---------------------------------------------------------------------------
def _tap_masks_folded(H, W, Nb, C):
    """(8, C, Nb*H*W) f32 masks, one per non-center 3x3 tap, for Nb images
    concatenated per-channel along the lane axis.  mask==1 iff the (dh,dw)-shifted
    source pixel lies inside the SAME image (zero-padding semantics; also kills
    the wrap-around of pltpu.roll and any cross-image leakage)."""
    L = H * W
    pos = np.arange(Nb * L) % L
    hh, ww = pos // W, pos % W
    ms = []
    for kh in range(3):
        for kw in range(3):
            dh, dw = kh - 1, kw - 1
            if dh == 0 and dw == 0:
                continue
            ok = (hh + dh >= 0) & (hh + dh < H) & (ww + dw >= 0) & (ww + dw < W)
            ms.append(ok.astype(np.float32))
    m = np.stack(ms, axis=0)[:, None, :]                          # (8, 1, Nb*L)
    # pre-broadcast over channels so the kernel does a single vmul per tap
    return jnp.asarray(np.broadcast_to(m, (8, C, Nb * L)).copy())


def _avgpool2_matrix(H, W, Nb):
    """(Nb*H*W, Nb*H*W/4) f32; right-multiplication == AvgPool2d(2) per image
    (block-diagonal over the Nb folded images)."""
    H2, W2 = H // 2, W // 2
    P = np.zeros((H * W, H2 * W2), np.float32)
    for h in range(H):
        for w in range(W):
            P[h * W + w, (h // 2) * W2 + (w // 2)] = 0.25
    return jnp.asarray(np.kron(np.eye(Nb, dtype=np.float32), P))


def _upsample2_matrix(H2, W2, Nb):
    """(Nb*H2*W2, 4*Nb*H2*W2) f32; right-multiplication == nearest Upsample(2)
    per image (block-diagonal over the Nb folded images)."""
    H, W = 2 * H2, 2 * W2
    U = np.zeros((H2 * W2, H * W), np.float32)
    for h in range(H):
        for w in range(W):
            U[(h // 2) * W2 + (w // 2), h * W + w] = 1.0
    return jnp.asarray(np.kron(np.eye(Nb, dtype=np.float32), U))


# ---------------------------------------------------------------------------
# in-kernel helpers (trace-time Python; all shapes / shifts static)
# ---------------------------------------------------------------------------
def _conv3x3_lanes(x, w_cat, masks_ref, W, act):
    """3x3 'same' conv in channels-major, (batch-folded) spatial-in-lanes layout.

    x: (Cin, Lf) f32, w_cat: (Cout, 9*Cin+1) with the bias in the last column,
    masks_ref: (8, Cin, Lf) VMEM ref of precomputed boundary masks.
    Returns (Cout, Lf) f32.
    """
    Cin, Lf = x.shape
    pieces = []
    m = 0
    for kh in range(3):
        for kw in range(3):
            dh, dw = kh - 1, kw - 1
            s = dh * W + dw                          # flat source offset
            if s == 0:
                pieces.append(x)
            else:
                # lane roll (XLU slot) + one vmul with the precomputed mask
                pieces.append(pltpu.roll(x, shift=(-s) % Lf, axis=1) * masks_ref[m])
                m += 1
    pieces.append(jnp.ones((1, Lf), jnp.float32))    # bias row -> bias via MXU
    lhs = jnp.concatenate(pieces, axis=0)            # (9*Cin+1, Lf), stays in vregs
    y = jnp.dot(w_cat, lhs, preferred_element_type=jnp.float32)
    if act == 'relu':
        return jnp.maximum(y, 0.0)
    return jax.nn.sigmoid(y)                         # decoded layer


# ---------------------------------------------------------------------------
# fused forward kernel: Nb images per grid step, everything stays in VMEM/vregs
# ---------------------------------------------------------------------------
def _dae_fused_kernel(x_ref, w_ref, mhi_ref, mlo_ref, pool_ref, up_ref, o_ref,
                      *, H, W, Nb):
    W2 = W // 2
    L = H * W

    # fold Nb images along the lane axis: (Nb, C, L) -> (C, Nb*L).
    # Slices are L(=256)-lane aligned, so this is pure vreg placement.
    x = jnp.concatenate([x_ref[b].astype(jnp.float32) for b in range(Nb)], axis=1)

    # downwards: Conv+ReLU -> AvgPool2d(2) -> Conv+ReLU
    h = _conv3x3_lanes(x, w_ref[0], mhi_ref, W, 'relu')
    h = jnp.dot(h, pool_ref[...], preferred_element_type=jnp.float32)   # (C, Nb*L/4)
    h = _conv3x3_lanes(h, w_ref[1], mlo_ref, W2, 'relu')

    # upwards: Conv+ReLU -> Upsample(2, nearest) -> Conv+ReLU
    h = _conv3x3_lanes(h, w_ref[2], mlo_ref, W2, 'relu')
    h = jnp.dot(h, up_ref[...], preferred_element_type=jnp.float32)     # (C, Nb*L)
    h = _conv3x3_lanes(h, w_ref[3], mhi_ref, W, 'relu')

    # decoded: Conv + Sigmoid
    h = _conv3x3_lanes(h, w_ref[4], mhi_ref, W, 'sigmoid')

    # unfold back to (Nb, C, L); slices are lane-aligned -> unmasked stores
    for b in range(Nb):
        o_ref[b] = h[:, b * L:(b + 1) * L].astype(o_ref.dtype)


# ---------------------------------------------------------------------------
# parameters (deterministic synthetic init, HWIO layout) and public wrapper
# ---------------------------------------------------------------------------
def init_params(key, in_channel=4):
    """5 convs of DenoisingAutoEncoder(structure=[4,'average',4], in_channel=4)."""
    cins = [in_channel, 4, 4, 4, 4]
    couts = [4, 4, 4, 4, in_channel]
    params = {}
    for i, (ci, co) in enumerate(zip(cins, couts)):
        key, kw, kb = jax.random.split(key, 3)
        params[f'w{i}'] = 0.3 * jax.random.normal(kw, (3, 3, ci, co), jnp.float32)
        params[f'b{i}'] = 0.05 * jax.random.normal(kb, (co,), jnp.float32)
    return params


def _pack_params(params, num_layers=5):
    """HWIO (3,3,Cin,Cout) weights -> (L, Cout, 9*Cin+1) with bias folded into
    the last column (matches the ones row appended to the im2col LHS)."""
    ws = []
    for i in range(num_layers):
        w = params[f'w{i}']
        co = w.shape[3]
        w9 = jnp.transpose(w, (3, 0, 1, 2)).reshape(co, -1)      # (Cout, 9*Cin)
        ws.append(jnp.concatenate([w9, params[f'b{i}'].reshape(co, 1)], axis=1))
    return jnp.stack(ws)                                         # (5, Cout, 9*Cin+1)


def dae_forward(x_nchw, params, images_per_step=None):
    """DenoisingAutoEncoder forward.  x_nchw: (N, C, H, W) in [0, 1]."""
    N, C, H, W = x_nchw.shape
    assert H % 2 == 0 and W % 2 == 0, "AvgPool2d(2)/Upsample(2) need even H, W"
    if images_per_step is None:
        # Fold pairs of images along the lane axis: fills the half-resolution
        # stage to >= 128 lanes; for N >= 4 this still leaves >= 2 grid steps
        # for v7x's two TensorCores.
        images_per_step = 2 if N % 2 == 0 else 1
    Nb = images_per_step
    assert N % Nb == 0
    G = N // Nb
    L, Ls = H * W, (H // 2) * (W // 2)

    w_cat = _pack_params(params)                         # (5, C, 9*C+1)
    masks_hi = _tap_masks_folded(H, W, Nb, C)            # (8, C, Nb*L)
    masks_lo = _tap_masks_folded(H // 2, W // 2, Nb, C)  # (8, C, Nb*Ls)
    # TODO(synk): dense pool/upsample maps are O((Nb*H*W)^2) — fine at 16x16
    #             (128/256 KiB) but should become factorized / roll-based for
    #             large images so the fused kernel stays inside v7x's 64 MiB VMEM.
    pool_mat = _avgpool2_matrix(H, W, Nb)                # (Nb*L, Nb*Ls)
    up_mat = _upsample2_matrix(H // 2, W // 2, Nb)       # (Nb*Ls, Nb*L)

    x_blk = x_nchw.reshape(N, C, L)                      # contiguous reshape only

    kernel = functools.partial(_dae_fused_kernel, H=H, W=W, Nb=Nb)
    out = pl.pallas_call(
        kernel,
        out_shape=jax.ShapeDtypeStruct((N, C, L), x_nchw.dtype),
        grid=(G,),
        in_specs=[
            pl.BlockSpec((Nb, C, L), lambda g: (g, 0, 0)),      # Nb images / step
            pl.BlockSpec(w_cat.shape, lambda g: (0, 0, 0)),     # weights (+bias)
            pl.BlockSpec(masks_hi.shape, lambda g: (0, 0, 0)),  # hi-res tap masks
            pl.BlockSpec(masks_lo.shape, lambda g: (0, 0, 0)),  # lo-res tap masks
            pl.BlockSpec(pool_mat.shape, lambda g: (0, 0)),     # AvgPool2d(2) map
            pl.BlockSpec(up_mat.shape, lambda g: (0, 0)),       # Upsample(2) map
        ],
        out_specs=pl.BlockSpec((Nb, C, L), lambda g: (g, 0, 0)),
        compiler_params=pltpu.CompilerParams(dimension_semantics=("parallel",)),
    )(x_blk, w_cat, masks_hi, masks_lo, pool_mat, up_mat)

    # TODO(synk): the module's forward also returns reg_loss (identically 0 at
    #             reg_strength=0.0) and emits logging range warnings; omitted.
    return out.reshape(N, C, H, W)


# ---------------------------------------------------------------------------
# Pure-JAX reference for correctness checking (NCHW end to end)
# ---------------------------------------------------------------------------
def _ref_conv(x, w, b, act):
    y = jax.lax.conv_general_dilated(
        x, w, window_strides=(1, 1), padding='SAME',
        dimension_numbers=('NCHW', 'HWIO', 'NCHW'),
        precision=jax.lax.Precision.HIGHEST)
    y = y + b.reshape(1, -1, 1, 1)
    if act == 'relu':
        return jnp.maximum(y, 0.0)
    return jax.nn.sigmoid(y)


def _ref_avgpool2(x):
    N, C, H, W = x.shape
    return x.reshape(N, C, H // 2, 2, W // 2, 2).mean(axis=(3, 5))


def _ref_upsample2(x):
    return jnp.repeat(jnp.repeat(x, 2, axis=2), 2, axis=3)


def reference_forward(x, params):
    x = _ref_conv(x, params['w0'], params['b0'], 'relu')
    x = _ref_avgpool2(x)
    x = _ref_conv(x, params['w1'], params['b1'], 'relu')
    x = _ref_conv(x, params['w2'], params['b2'], 'relu')
    x = _ref_upsample2(x)
    x = _ref_conv(x, params['w3'], params['b3'], 'relu')
    x = _ref_conv(x, params['w4'], params['b4'], 'sigmoid')
    return x


if __name__ == "__main__":
    key = jax.random.PRNGKey(0)
    k_x, k_p = jax.random.split(key)

    # Input consistent with the module: NCHW image batch in [x_min, x_max] = [0, 1].
    x = jax.random.uniform(k_x, (2, 4, 16, 16), dtype=jnp.float32)
    params = init_params(k_p, in_channel=4)

    out = jax.jit(dae_forward)(x, params)
    out = jax.block_until_ready(out)

    ref = reference_forward(x, params)
    assert out.shape == x.shape, (out.shape, x.shape)
    assert bool(jnp.all(out >= 0.0)) and bool(jnp.all(out <= 1.0))
    err = float(jnp.max(jnp.abs(out - ref)))
    # tolerance documents the default (non-HIGHEST) MXU precision inside the kernel
    assert jnp.allclose(out, ref, atol=2e-3, rtol=2e-3), f"mismatch vs reference: {err}"

    print("KERNEL_OK")
</pallas_src>

<mosaic_0001>
module attributes {stable_mosaic.version = 11 : i64} {
  func.func @_dae_fused_kernel(%arg0: i32, %arg1: memref<2x4x256xf32, #tpu.memory_space<vmem>>, %arg2: memref<5x4x37xf32, #tpu.memory_space<vmem>>, %arg3: memref<8x4x512xf32, #tpu.memory_space<vmem>>, %arg4: memref<8x4x128xf32, #tpu.memory_space<vmem>>, %arg5: memref<512x128xf32, #tpu.memory_space<vmem>>, %arg6: memref<128x512xf32, #tpu.memory_space<vmem>>, %arg7: memref<2x4x256xf32, #tpu.memory_space<vmem>>) attributes {dimension_semantics = [#tpu.dimension_semantics<parallel>], iteration_bounds = array<i64: 1>, scalar_prefetch = 0 : i64, scratch_operands = 0 : i64, tpu.core_type = #tpu.core_type<tc>, window_params = [{transform_indices = @transform_0, window_bounds = array<i64: 2, 4, 256>}, {pipeline_mode = #tpu.pipeline_mode<synchronous>, transform_indices = @transform_1, window_bounds = array<i64: 5, 4, 37>}, {pipeline_mode = #tpu.pipeline_mode<synchronous>, transform_indices = @transform_2, window_bounds = array<i64: 8, 4, 512>}, {pipeline_mode = #tpu.pipeline_mode<synchronous>, transform_indices = @transform_3, window_bounds = array<i64: 8, 4, 128>}, {pipeline_mode = #tpu.pipeline_mode<synchronous>, transform_indices = @transform_4, window_bounds = array<i64: 512, 128>}, {pipeline_mode = #tpu.pipeline_mode<synchronous>, transform_indices = @transform_5, window_bounds = array<i64: 128, 512>}, {transform_indices = @transform_6, window_bounds = array<i64: 2, 4, 256>}]} {
    %c0 = arith.constant 0 : index
    %c0_0 = arith.constant 0 : index
    %c0_1 = arith.constant 0 : index
    %0 = vector.load %arg1[%c0, %c0_0, %c0_1] : memref<2x4x256xf32, #tpu.memory_space<vmem>>, vector<1x4x256xf32>
    %1 = vector.shape_cast %0 : vector<1x4x256xf32> to vector<4x256xf32>
    %c1 = arith.constant 1 : index
    %c0_2 = arith.constant 0 : index
    %c0_3 = arith.constant 0 : index
    %2 = vector.load %arg1[%c1, %c0_2, %c0_3] : memref<2x4x256xf32, #tpu.memory_space<vmem>>, vector<1x4x256xf32>
    %3 = vector.shape_cast %2 : vector<1x4x256xf32> to vector<4x256xf32>
    %4 = tpu.concatenate %1, %3 in 1 : vector<4x256xf32>, vector<4x256xf32> -> vector<4x512xf32>
    %c0_4 = arith.constant 0 : index
    %c0_5 = arith.constant 0 : index
    %c0_6 = arith.constant 0 : index
    %5 = vector.load %arg2[%c0_4, %c0_5, %c0_6] : memref<5x4x37xf32, #tpu.memory_space<vmem>>, vector<1x4x37xf32>
    %6 = vector.shape_cast %5 : vector<1x4x37xf32> to vector<4x37xf32>
    %c17_i32 = arith.constant 17 : i32
    %7 = tpu.dynamic_rotate %4 by %c17_i32 dim 1 : vector<4x512xf32>, i32 -> vector<4x512xf32>
    %c0_7 = arith.constant 0 : index
    %c0_8 = arith.constant 0 : index
    %c0_9 = arith.constant 0 : index
    %8 = vector.load %arg3[%c0_7, %c0_8, %c0_9] : memref<8x4x512xf32, #tpu.memory_space<vmem>>, vector<1x4x512xf32>
    %9 = vector.shape_cast %8 : vector<1x4x512xf32> to vector<4x512xf32>
    %10 = arith.mulf %7, %9 : vector<4x512xf32>
    %c16_i32 = arith.constant 16 : i32
    %11 = tpu.dynamic_rotate %4 by %c16_i32 dim 1 : vector<4x512xf32>, i32 -> vector<4x512xf32>
    %c1_10 = arith.constant 1 : index
    %c0_11 = arith.constant 0 : index
    %c0_12 = arith.constant 0 : index
    %12 = vector.load %arg3[%c1_10, %c0_11, %c0_12] : memref<8x4x512xf32, #tpu.memory_space<vmem>>, vector<1x4x512xf32>
    %13 = vector.shape_cast %12 : vector<1x4x512xf32> to vector<4x512xf32>
    %14 = arith.mulf %11, %13 : vector<4x512xf32>
    %c15_i32 = arith.constant 15 : i32
    %15 = tpu.dynamic_rotate %4 by %c15_i32 dim 1 : vector<4x512xf32>, i32 -> vector<4x512xf32>
    %c2 = arith.constant 2 : index
    %c0_13 = arith.constant 0 : index
    %c0_14 = arith.constant 0 : index
    %16 = vector.load %arg3[%c2, %c0_13, %c0_14] : memref<8x4x512xf32, #tpu.memory_space<vmem>>, vector<1x4x512xf32>
    %17 = vector.shape_cast %16 : vector<1x4x512xf32> to vector<4x512xf32>
    %18 = arith.mulf %15, %17 : vector<4x512xf32>
    %c1_i32 = arith.constant 1 : i32
    %19 = tpu.dynamic_rotate %4 by %c1_i32 dim 1 : vector<4x512xf32>, i32 -> vector<4x512xf32>
    %c3 = arith.constant 3 : index
    %c0_15 = arith.constant 0 : index
    %c0_16 = arith.constant 0 : index
    %20 = vector.load %arg3[%c3, %c0_15, %c0_16] : memref<8x4x512xf32, #tpu.memory_space<vmem>>, vector<1x4x512xf32>
    %21 = vector.shape_cast %20 : vector<1x4x512xf32> to vector<4x512xf32>
    %22 = arith.mulf %19, %21 : vector<4x512xf32>
    %c511_i32 = arith.constant 511 : i32
    %23 = tpu.dynamic_rotate %4 by %c511_i32 dim 1 : vector<4x512xf32>, i32 -> vector<4x512xf32>
    %c4 = arith.constant 4 : index
    %c0_17 = arith.constant 0 : index
    %c0_18 = arith.constant 0 : index
    %24 = vector.load %arg3[%c4, %c0_17, %c0_18] : memref<8x4x512xf32, #tpu.memory_space<vmem>>, vector<1x4x512xf32>
    %25 = vector.shape_cast %24 : vector<1x4x512xf32> to vector<4x512xf32>
    %26 = arith.mulf %23, %25 : vector<4x512xf32>
    %c497_i32 = arith.constant 497 : i32
    %27 = tpu.dynamic_rotate %4 by %c497_i32 dim 1 : vector<4x512xf32>, i32 -> vector<4x512xf32>
    %c5 = arith.constant 5 : index
    %c0_19 = arith.constant 0 : index
    %c0_20 = arith.constant 0 : index
    %28 = vector.load %arg3[%c5, %c0_19, %c0_20] : memref<8x4x512xf32, #tpu.memory_space<vmem>>, vector<1x4x512xf32>
    %29 = vector.shape_cast %28 : vector<1x4x512xf32> to vector<4x512xf32>
    %30 = arith.mulf %27, %29 : vector<4x512xf32>
    %c496_i32 = arith.constant 496 : i32
    %31 = tpu.dynamic_rotate %4 by %c496_i32 dim 1 : vector<4x512xf32>, i32 -> vector<4x512xf32>
    %c6 = arith.constant 6 : index
    %c0_21 = arith.constant 0 : index
    %c0_22 = arith.constant 0 : index
    %32 = vector.load %arg3[%c6, %c0_21, %c0_22] : memref<8x4x512xf32, #tpu.memory_space<vmem>>, vector<1x4x512xf32>
    %33 = vector.shape_cast %32 : vector<1x4x512xf32> to vector<4x512xf32>
    %34 = arith.mulf %31, %33 : vector<4x512xf32>
    %c495_i32 = arith.constant 495 : i32
    %35 = tpu.dynamic_rotate %4 by %c495_i32 dim 1 : vector<4x512xf32>, i32 -> vector<4x512xf32>
    %c7 = arith.constant 7 : index
    %c0_23 = arith.constant 0 : index
    %c0_24 = arith.constant 0 : index
    %36 = vector.load %arg3[%c7, %c0_23, %c0_24] : memref<8x4x512xf32, #tpu.memory_space<vmem>>, vector<1x4x512xf32>
    %37 = vector.shape_cast %36 : vector<1x4x512xf32> to vector<4x512xf32>
    %38 = arith.mulf %35, %37 : vector<4x512xf32>
    %cst = arith.constant 1.000000e+00 : f32
    %39 = vector.broadcast %cst : f32 to vector<1x512xf32>
    %40 = tpu.concatenate %10, %14, %18, %22, %4, %26, %30, %34, %38, %39 in 0 : vector<4x512xf32>, vector<4x512xf32>, vector<4x512xf32>, vector<4x512xf32>, vector<4x512xf32>, vector<4x512xf32>, vector<4x512xf32>, vector<4x512xf32>, vector<4x512xf32>, vector<1x512xf32> -> vector<37x512xf32>
    %cst_25 = arith.constant dense<0.000000e+00> : vector<4x512xf32>
    %41 = tpu.matmul %6, %40, %cst_25 {dimension_numbers = #tpu.dot_dimension_numbers<[1], [0], [0], [1], [0, 0, 1, 1], [], []>} : vector<4x37xf32>, vector<37x512xf32>, vector<4x512xf32> -> vector<4x512xf32>
    %cst_26 = arith.constant 0.000000e+00 : f32
    %42 = vector.broadcast %cst_26 : f32 to vector<4x512xf32>
    %43 = arith.maximumf %41, %42 : vector<4x512xf32>
    %c0_27 = arith.constant 0 : index
    %c0_28 = arith.constant 0 : index
    %44 = vector.load %arg5[%c0_27, %c0_28] : memref<512x128xf32, #tpu.memory_space<vmem>>, vector<512x128xf32>
    %cst_29 = arith.constant dense<0.000000e+00> : vector<4x128xf32>
    %45 = tpu.matmul %43, %44, %cst_29 {dimension_numbers = #tpu.dot_dimension_numbers<[1], [0], [0], [1], [0, 0, 1, 1], [], []>} : vector<4x512xf32>, vector<512x128xf32>, vector<4x128xf32> -> vector<4x128xf32>
    %c1_30 = arith.constant 1 : index
    %c0_31 = arith.constant 0 : index
    %c0_32 = arith.constant 0 : index
    %46 = vector.load %arg2[%c1_30, %c0_31, %c0_32] : memref<5x4x37xf32, #tpu.memory_space<vmem>>, vector<1x4x37xf32>
    %47 = vector.shape_cast %46 : vector<1x4x37xf32> to vector<4x37xf32>
    %c9_i32 = arith.constant 9 : i32
    %48 = tpu.dynamic_rotate %45 by %c9_i32 dim 1 : vector<4x128xf32>, i32 -> vector<4x128xf32>
    %c0_33 = arith.constant 0 : index
    %c0_34 = arith.constant 0 : index
    %c0_35 = arith.constant 0 : index
    %49 = vector.load %arg4[%c0_33, %c0_34, %c0_35] : memref<8x4x128xf32, #tpu.memory_space<vmem>>, vector<1x4x128xf32>
    %50 = vector.shape_cast %49 : vector<1x4x128xf32> to vector<4x128xf32>
    %51 = arith.mulf %48, %50 : vector<4x128xf32>
    %c8_i32 = arith.constant 8 : i32
    %52 = tpu.dynamic_rotate %45 by %c8_i32 dim 1 : vector<4x128xf32>, i32 -> vector<4x128xf32>
    %c1_36 = arith.constant 1 : index
    %c0_37 = arith.constant 0 : index
    %c0_38 = arith.constant 0 : index
    %53 = vector.load %arg4[%c1_36, %c0_37, %c0_38] : memref<8x4x128xf32, #tpu.memory_space<vmem>>, vector<1x4x128xf32>
    %54 = vector.shape_cast %53 : vector<1x4x128xf32> to vector<4x128xf32>
    %55 = arith.mulf %52, %54 : vector<4x128xf32>
    %c7_i32 = arith.constant 7 : i32
    %56 = tpu.dynamic_rotate %45 by %c7_i32 dim 1 : vector<4x128xf32>, i32 -> vector<4x128xf32>
    %c2_39 = arith.constant 2 : index
    %c0_40 = arith.constant 0 : index
    %c0_41 = arith.constant 0 : index
    %57 = vector.load %arg4[%c2_39, %c0_40, %c0_41] : memref<8x4x128xf32, #tpu.memory_space<vmem>>, vector<1x4x128xf32>
    %58 = vector.shape_cast %57 : vector<1x4x128xf32> to vector<4x128xf32>
    %59 = arith.mulf %56, %58 : vector<4x128xf32>
    %c1_i32_42 = arith.constant 1 : i32
    %60 = tpu.dynamic_rotate %45 by %c1_i32_42 dim 1 : vector<4x128xf32>, i32 -> vector<4x128xf32>
    %c3_43 = arith.constant 3 : index
    %c0_44 = arith.constant 0 : index
    %c0_45 = arith.constant 0 : index
    %61 = vector.load %arg4[%c3_43, %c0_44, %c0_45] : memref<8x4x128xf32, #tpu.memory_space<vmem>>, vector<1x4x128xf32>
    %62 = vector.shape_cast %61 : vector<1x4x128xf32> to vector<4x128xf32>
    %63 = arith.mulf %60, %62 : vector<4x128xf32>
    %c127_i32 = arith.constant 127 : i32
    %64 = tpu.dynamic_rotate %45 by %c127_i32 dim 1 : vector<4x128xf32>, i32 -> vector<4x128xf32>
    %c4_46 = arith.constant 4 : index
    %c0_47 = arith.constant 0 : index
    %c0_48 = arith.constant 0 : index
    %65 = vector.load %arg4[%c4_46, %c0_47, %c0_48] : memref<8x4x128xf32, #tpu.memory_space<vmem>>, vector<1x4x128xf32>
    %66 = vector.shape_cast %65 : vector<1x4x128xf32> to vector<4x128xf32>
    %67 = arith.mulf %64, %66 : vector<4x128xf32>
    %c121_i32 = arith.constant 121 : i32
    %68 = tpu.dynamic_rotate %45 by %c121_i32 dim 1 : vector<4x128xf32>, i32 -> vector<4x128xf32>
    %c5_49 = arith.constant 5 : index
    %c0_50 = arith.constant 0 : index
    %c0_51 = arith.constant 0 : index
    %69 = vector.load %arg4[%c5_49, %c0_50, %c0_51] : memref<8x4x128xf32, #tpu.memory_space<vmem>>, vector<1x4x128xf32>
    %70 = vector.shape_cast %69 : vector<1x4x128xf32> to vector<4x128xf32>
    %71 = arith.mulf %68, %70 : vector<4x128xf32>
    %c120_i32 = arith.constant 120 : i32
    %72 = tpu.dynamic_rotate %45 by %c120_i32 dim 1 : vector<4x128xf32>, i32 -> vector<4x128xf32>
    %c6_52 = arith.constant 6 : index
    %c0_53 = arith.constant 0 : index
    %c0_54 = arith.constant 0 : index
    %73 = vector.load %arg4[%c6_52, %c0_53, %c0_54] : memref<8x4x128xf32, #tpu.memory_space<vmem>>, vector<1x4x128xf32>
    %74 = vector.shape_cast %73 : vector<1x4x128xf32> to vector<4x128xf32>
    %75 = arith.mulf %72, %74 : vector<4x128xf32>
    %c119_i32 = arith.constant 119 : i32
    %76 = tpu.dynamic_rotate %45 by %c119_i32 dim 1 : vector<4x128xf32>, i32 -> vector<4x128xf32>
    %c7_55 = arith.constant 7 : index
    %c0_56 = arith.constant 0 : index
    %c0_57 = arith.constant 0 : index
    %77 = vector.load %arg4[%c7_55, %c0_56, %c0_57] : memref<8x4x128xf32, #tpu.memory_space<vmem>>, vector<1x4x128xf32>
    %78 = vector.shape_cast %77 : vector<1x4x128xf32> to vector<4x128xf32>
    %79 = arith.mulf %76, %78 : vector<4x128xf32>
    %cst_58 = arith.constant 1.000000e+00 : f32
    %80 = vector.broadcast %cst_58 : f32 to vector<1x128xf32>
    %81 = tpu.concatenate %51, %55, %59, %63, %45, %67, %71, %75, %79, %80 in 0 : vector<4x128xf32>, vector<4x128xf32>, vector<4x128xf32>, vector<4x128xf32>, vector<4x128xf32>, vector<4x128xf32>, vector<4x128xf32>, vector<4x128xf32>, vector<4x128xf32>, vector<1x128xf32> -> vector<37x128xf32>
    %cst_59 = arith.constant dense<0.000000e+00> : vector<4x128xf32>
    %82 = tpu.matmul %47, %81, %cst_59 {dimension_numbers = #tpu.dot_dimension_numbers<[1], [0], [0], [1], [0, 0, 1, 1], [], []>} : vector<4x37xf32>, vector<37x128xf32>, vector<4x128xf32> -> vector<4x128xf32>
    %cst_60 = arith.constant 0.000000e+00 : f32
    %83 = vector.broadcast %cst_60 : f32 to vector<4x128xf32>
    %84 = arith.maximumf %82, %83 : vector<4x128xf32>
    %c2_61 = arith.constant 2 : index
    %c0_62 = arith.constant 0 : index
    %c0_63 = arith.constant 0 : index
    %85 = vector.load %arg2[%c2_61, %c0_62, %c0_63] : memref<5x4x37xf32, #tpu.memory_space<vmem>>, vector<1x4x37xf32>
    %86 = vector.shape_cast %85 : vector<1x4x37xf32> to vector<4x37xf32>
    %c9_i32_64 = arith.constant 9 : i32
    %87 = tpu.dynamic_rotate %84 by %c9_i32_64 dim 1 : vector<4x128xf32>, i32 -> vector<4x128xf32>
    %c0_65 = arith.constant 0 : index
    %c0_66 = arith.constant 0 : index
    %c0_67 = arith.constant 0 : index
    %88 = vector.load %arg4[%c0_65, %c0_66, %c0_67] : memref<8x4x128xf32, #tpu.memory_space<vmem>>, vector<1x4x128xf32>
    %89 = vector.shape_cast %88 : vector<1x4x128xf32> to vector<4x128xf32>
    %90 = arith.mulf %87, %89 : vector<4x128xf32>
    %c8_i32_68 = arith.constant 8 : i32
    %91 = tpu.dynamic_rotate %84 by %c8_i32_68 dim 1 : vector<4x128xf32>, i32 -> vector<4x128xf32>
    %c1_69 = arith.constant 1 : index
    %c0_70 = arith.constant 0 : index
    %c0_71 = arith.constant 0 : index
    %92 = vector.load %arg4[%c1_69, %c0_70, %c0_71] : memref<8x4x128xf32, #tpu.memory_space<vmem>>, vector<1x4x128xf32>
    %93 = vector.shape_cast %92 : vector<1x4x128xf32> to vector<4x128xf32>
    %94 = arith.mulf %91, %93 : vector<4x128xf32>
    %c7_i32_72 = arith.constant 7 : i32
    %95 = tpu.dynamic_rotate %84 by %c7_i32_72 dim 1 : vector<4x128xf32>, i32 -> vector<4x128xf32>
    %c2_73 = arith.constant 2 : index
    %c0_74 = arith.constant 0 : index
    %c0_75 = arith.constant 0 : index
    %96 = vector.load %arg4[%c2_73, %c0_74, %c0_75] : memref<8x4x128xf32, #tpu.memory_space<vmem>>, vector<1x4x128xf32>
    %97 = vector.shape_cast %96 : vector<1x4x128xf32> to vector<4x128xf32>
    %98 = arith.mulf %95, %97 : vector<4x128xf32>
    %c1_i32_76 = arith.constant 1 : i32
    %99 = tpu.dynamic_rotate %84 by %c1_i32_76 dim 1 : vector<4x128xf32>, i32 -> vector<4x128xf32>
    %c3_77 = arith.constant 3 : index
    %c0_78 = arith.constant 0 : index
    %c0_79 = arith.constant 0 : index
    %100 = vector.load %arg4[%c3_77, %c0_78, %c0_79] : memref<8x4x128xf32, #tpu.memory_space<vmem>>, vector<1x4x128xf32>
    %101 = vector.shape_cast %100 : vector<1x4x128xf32> to vector<4x128xf32>
    %102 = arith.mulf %99, %101 : vector<4x128xf32>
    %c127_i32_80 = arith.constant 127 : i32
    %103 = tpu.dynamic_rotate %84 by %c127_i32_80 dim 1 : vector<4x128xf32>, i32 -> vector<4x128xf32>
    %c4_81 = arith.constant 4 : index
    %c0_82 = arith.constant 0 : index
    %c0_83 = arith.constant 0 : index
    %104 = vector.load %arg4[%c4_81, %c0_82, %c0_83] : memref<8x4x128xf32, #tpu.memory_space<vmem>>, vector<1x4x128xf32>
    %105 = vector.shape_cast %104 : vector<1x4x128xf32> to vector<4x128xf32>
    %106 = arith.mulf %103, %105 : vector<4x128xf32>
    %c121_i32_84 = arith.constant 121 : i32
    %107 = tpu.dynamic_rotate %84 by %c121_i32_84 dim 1 : vector<4x128xf32>, i32 -> vector<4x128xf32>
    %c5_85 = arith.constant 5 : index
    %c0_86 = arith.constant 0 : index
    %c0_87 = arith.constant 0 : index
    %108 = vector.load %arg4[%c5_85, %c0_86, %c0_87] : memref<8x4x128xf32, #tpu.memory_space<vmem>>, vector<1x4x128xf32>
    %109 = vector.shape_cast %108 : vector<1x4x128xf32> to vector<4x128xf32>
    %110 = arith.mulf %107, %109 : vector<4x128xf32>
    %c120_i32_88 = arith.constant 120 : i32
    %111 = tpu.dynamic_rotate %84 by %c120_i32_88 dim 1 : vector<4x128xf32>, i32 -> vector<4x128xf32>
    %c6_89 = arith.constant 6 : index
    %c0_90 = arith.constant 0 : index
    %c0_91 = arith.constant 0 : index
    %112 = vector.load %arg4[%c6_89, %c0_90, %c0_91] : memref<8x4x128xf32, #tpu.memory_space<vmem>>, vector<1x4x128xf32>
    %113 = vector.shape_cast %112 : vector<1x4x128xf32> to vector<4x128xf32>
    %114 = arith.mulf %111, %113 : vector<4x128xf32>
    %c119_i32_92 = arith.constant 119 : i32
    %115 = tpu.dynamic_rotate %84 by %c119_i32_92 dim 1 : vector<4x128xf32>, i32 -> vector<4x128xf32>
    %c7_93 = arith.constant 7 : index
    %c0_94 = arith.constant 0 : index
    %c0_95 = arith.constant 0 : index
    %116 = vector.load %arg4[%c7_93, %c0_94, %c0_95] : memref<8x4x128xf32, #tpu.memory_space<vmem>>, vector<1x4x128xf32>
    %117 = vector.shape_cast %116 : vector<1x4x128xf32> to vector<4x128xf32>
    %118 = arith.mulf %115, %117 : vector<4x128xf32>
    %cst_96 = arith.constant 1.000000e+00 : f32
    %119 = vector.broadcast %cst_96 : f32 to vector<1x128xf32>
    %120 = tpu.concatenate %90, %94, %98, %102, %84, %106, %110, %114, %118, %119 in 0 : vector<4x128xf32>, vector<4x128xf32>, vector<4x128xf32>, vector<4x128xf32>, vector<4x128xf32>, vector<4x128xf32>, vector<4x128xf32>, vector<4x128xf32>, vector<4x128xf32>, vector<1x128xf32> -> vector<37x128xf32>
    %cst_97 = arith.constant dense<0.000000e+00> : vector<4x128xf32>
    %121 = tpu.matmul %86, %120, %cst_97 {dimension_numbers = #tpu.dot_dimension_numbers<[1], [0], [0], [1], [0, 0, 1, 1], [], []>} : vector<4x37xf32>, vector<37x128xf32>, vector<4x128xf32> -> vector<4x128xf32>
    %cst_98 = arith.constant 0.000000e+00 : f32
    %122 = vector.broadcast %cst_98 : f32 to vector<4x128xf32>
    %123 = arith.maximumf %121, %122 : vector<4x128xf32>
    %c0_99 = arith.constant 0 : index
    %c0_100 = arith.constant 0 : index
    %124 = vector.load %arg6[%c0_99, %c0_100] : memref<128x512xf32, #tpu.memory_space<vmem>>, vector<128x512xf32>
    %cst_101 = arith.constant dense<0.000000e+00> : vector<4x512xf32>
    %125 = tpu.matmul %123, %124, %cst_101 {dimension_numbers = #tpu.dot_dimension_numbers<[1], [0], [0], [1], [0, 0, 1, 1], [], []>} : vector<4x128xf32>, vector<128x512xf32>, vector<4x512xf32> -> vector<4x512xf32>
    %c3_102 = arith.constant 3 : index
    %c0_103 = arith.constant 0 : index
    %c0_104 = arith.constant 0 : index
    %126 = vector.load %arg2[%c3_102, %c0_103, %c0_104] : memref<5x4x37xf32, #tpu.memory_space<vmem>>, vector<1x4x37xf32>
    %127 = vector.shape_cast %126 : vector<1x4x37xf32> to vector<4x37xf32>
    %c17_i32_105 = arith.constant 17 : i32
    %128 = tpu.dynamic_rotate %125 by %c17_i32_105 dim 1 : vector<4x512xf32>, i32 -> vector<4x512xf32>
    %c0_106 = arith.constant 0 : index
    %c0_107 = arith.constant 0 : index
    %c0_108 = arith.constant 0 : index
    %129 = vector.load %arg3[%c0_106, %c0_107, %c0_108] : memref<8x4x512xf32, #tpu.memory_space<vmem>>, vector<1x4x512xf32>
    %130 = vector.shape_cast %129 : vector<1x4x512xf32> to vector<4x512xf32>
    %131 = arith.mulf %128, %130 : vector<4x512xf32>
    %c16_i32_109 = arith.constant 16 : i32
    %132 = tpu.dynamic_rotate %125 by %c16_i32_109 dim 1 : vector<4x512xf32>, i32 -> vector<4x512xf32>
    %c1_110 = arith.constant 1 : index
    %c0_111 = arith.constant 0 : index
    %c0_112 = arith.constant 0 : index
    %133 = vector.load %arg3[%c1_110, %c0_111, %c0_112] : memref<8x4x512xf32, #tpu.memory_space<vmem>>, vector<1x4x512xf32>
    %134 = vector.shape_cast %133 : vector<1x4x512xf32> to vector<4x512xf32>
    %135 = arith.mulf %132, %134 : vector<4x512xf32>
    %c15_i32_113 = arith.constant 15 : i32
    %136 = tpu.dynamic_rotate %125 by %c15_i32_113 dim 1 : vector<4x512xf32>, i32 -> vector<4x512xf32>
    %c2_114 = arith.constant 2 : index
    %c0_115 = arith.constant 0 : index
    %c0_116 = arith.constant 0 : index
    %137 = vector.load %arg3[%c2_114, %c0_115, %c0_116] : memref<8x4x512xf32, #tpu.memory_space<vmem>>, vector<1x4x512xf32>
    %138 = vector.shape_cast %137 : vector<1x4x512xf32> to vector<4x512xf32>
    %139 = arith.mulf %136, %138 : vector<4x512xf32>
    %c1_i32_117 = arith.constant 1 : i32
    %140 = tpu.dynamic_rotate %125 by %c1_i32_117 dim 1 : vector<4x512xf32>, i32 -> vector<4x512xf32>
    %c3_118 = arith.constant 3 : index
    %c0_119 = arith.constant 0 : index
    %c0_120 = arith.constant 0 : index
    %141 = vector.load %arg3[%c3_118, %c0_119, %c0_120] : memref<8x4x512xf32, #tpu.memory_space<vmem>>, vector<1x4x512xf32>
    %142 = vector.shape_cast %141 : vector<1x4x512xf32> to vector<4x512xf32>
    %143 = arith.mulf %140, %142 : vector<4x512xf32>
    %c511_i32_121 = arith.constant 511 : i32
    %144 = tpu.dynamic_rotate %125 by %c511_i32_121 dim 1 : vector<4x512xf32>, i32 -> vector<4x512xf32>
    %c4_122 = arith.constant 4 : index
    %c0_123 = arith.constant 0 : index
    %c0_124 = arith.constant 0 : index
    %145 = vector.load %arg3[%c4_122, %c0_123, %c0_124] : memref<8x4x512xf32, #tpu.memory_space<vmem>>, vector<1x4x512xf32>
    %146 = vector.shape_cast %145 : vector<1x4x512xf32> to vector<4x512xf32>
    %147 = arith.mulf %144, %146 : vector<4x512xf32>
    %c497_i32_125 = arith.constant 497 : i32
    %148 = tpu.dynamic_rotate %125 by %c497_i32_125 dim 1 : vector<4x512xf32>, i32 -> vector<4x512xf32>
    %c5_126 = arith.constant 5 : index
    %c0_127 = arith.constant 0 : index
    %c0_128 = arith.constant 0 : index
    %149 = vector.load %arg3[%c5_126, %c0_127, %c0_128] : memref<8x4x512xf32, #tpu.memory_space<vmem>>, vector<1x4x512xf32>
    %150 = vector.shape_cast %149 : vector<1x4x512xf32> to vector<4x512xf32>
    %151 = arith.mulf %148, %150 : vector<4x512xf32>
    %c496_i32_129 = arith.constant 496 : i32
    %152 = tpu.dynamic_rotate %125 by %c496_i32_129 dim 1 : vector<4x512xf32>, i32 -> vector<4x512xf32>
    %c6_130 = arith.constant 6 : index
    %c0_131 = arith.constant 0 : index
    %c0_132 = arith.constant 0 : index
    %153 = vector.load %arg3[%c6_130, %c0_131, %c0_132] : memref<8x4x512xf32, #tpu.memory_space<vmem>>, vector<1x4x512xf32>
    %154 = vector.shape_cast %153 : vector<1x4x512xf32> to vector<4x512xf32>
    %155 = arith.mulf %152, %154 : vector<4x512xf32>
    %c495_i32_133 = arith.constant 495 : i32
    %156 = tpu.dynamic_rotate %125 by %c495_i32_133 dim 1 : vector<4x512xf32>, i32 -> vector<4x512xf32>
    %c7_134 = arith.constant 7 : index
    %c0_135 = arith.constant 0 : index
    %c0_136 = arith.constant 0 : index
    %157 = vector.load %arg3[%c7_134, %c0_135, %c0_136] : memref<8x4x512xf32, #tpu.memory_space<vmem>>, vector<1x4x512xf32>
    %158 = vector.shape_cast %157 : vector<1x4x512xf32> to vector<4x512xf32>
    %159 = arith.mulf %156, %158 : vector<4x512xf32>
    %cst_137 = arith.constant 1.000000e+00 : f32
    %160 = vector.broadcast %cst_137 : f32 to vector<1x512xf32>
    %161 = tpu.concatenate %131, %135, %139, %143, %125, %147, %151, %155, %159, %160 in 0 : vector<4x512xf32>, vector<4x512xf32>, vector<4x512xf32>, vector<4x512xf32>, vector<4x512xf32>, vector<4x512xf32>, vector<4x512xf32>, vector<4x512xf32>, vector<4x512xf32>, vector<1x512xf32> -> vector<37x512xf32>
    %cst_138 = arith.constant dense<0.000000e+00> : vector<4x512xf32>
    %162 = tpu.matmul %127, %161, %cst_138 {dimension_numbers = #tpu.dot_dimension_numbers<[1], [0], [0], [1], [0, 0, 1, 1], [], []>} : vector<4x37xf32>, vector<37x512xf32>, vector<4x512xf32> -> vector<4x512xf32>
    %cst_139 = arith.constant 0.000000e+00 : f32
    %163 = vector.broadcast %cst_139 : f32 to vector<4x512xf32>
    %164 = arith.maximumf %162, %163 : vector<4x512xf32>
    %c4_140 = arith.constant 4 : index
    %c0_141 = arith.constant 0 : index
    %c0_142 = arith.constant 0 : index
    %165 = vector.load %arg2[%c4_140, %c0_141, %c0_142] : memref<5x4x37xf32, #tpu.memory_space<vmem>>, vector<1x4x37xf32>
    %166 = vector.shape_cast %165 : vector<1x4x37xf32> to vector<4x37xf32>
    %c17_i32_143 = arith.constant 17 : i32
    %167 = tpu.dynamic_rotate %164 by %c17_i32_143 dim 1 : vector<4x512xf32>, i32 -> vector<4x512xf32>
    %c0_144 = arith.constant 0 : index
    %c0_145 = arith.constant 0 : index
    %c0_146 = arith.constant 0 : index
    %168 = vector.load %arg3[%c0_144, %c0_145, %c0_146] : memref<8x4x512xf32, #tpu.memory_space<vmem>>, vector<1x4x512xf32>
    %169 = vector.shape_cast %168 : vector<1x4x512xf32> to vector<4x512xf32>
    %170 = arith.mulf %167, %169 : vector<4x512xf32>
    %c16_i32_147 = arith.constant 16 : i32
    %171 = tpu.dynamic_rotate %164 by %c16_i32_147 dim 1 : vector<4x512xf32>, i32 -> vector<4x512xf32>
    %c1_148 = arith.constant 1 : index
    %c0_149 = arith.constant 0 : index
    %c0_150 = arith.constant 0 : index
    %172 = vector.load %arg3[%c1_148, %c0_149, %c0_150] : memref<8x4x512xf32, #tpu.memory_space<vmem>>, vector<1x4x512xf32>
    %173 = vector.shape_cast %172 : vector<1x4x512xf32> to vector<4x512xf32>
    %174 = arith.mulf %171, %173 : vector<4x512xf32>
    %c15_i32_151 = arith.constant 15 : i32
    %175 = tpu.dynamic_rotate %164 by %c15_i32_151 dim 1 : vector<4x512xf32>, i32 -> vector<4x512xf32>
    %c2_152 = arith.constant 2 : index
    %c0_153 = arith.constant 0 : index
    %c0_154 = arith.constant 0 : index
    %176 = vector.load %arg3[%c2_152, %c0_153, %c0_154] : memref<8x4x512xf32, #tpu.memory_space<vmem>>, vector<1x4x512xf32>
    %177 = vector.shape_cast %176 : vector<1x4x512xf32> to vector<4x512xf32>
    %178 = arith.mulf %175, %177 : vector<4x512xf32>
    %c1_i32_155 = arith.constant 1 : i32
    %179 = tpu.dynamic_rotate %164 by %c1_i32_155 dim 1 : vector<4x512xf32>, i32 -> vector<4x512xf32>
    %c3_156 = arith.constant 3 : index
    %c0_157 = arith.constant 0 : index
    %c0_158 = arith.constant 0 : index
    %180 = vector.load %arg3[%c3_156, %c0_157, %c0_158] : memref<8x4x512xf32, #tpu.memory_space<vmem>>, vector<1x4x512xf32>
    %181 = vector.shape_cast %180 : vector<1x4x512xf32> to vector<4x512xf32>
    %182 = arith.mulf %179, %181 : vector<4x512xf32>
    %c511_i32_159 = arith.constant 511 : i32
    %183 = tpu.dynamic_rotate %164 by %c511_i32_159 dim 1 : vector<4x512xf32>, i32 -> vector<4x512xf32>
    %c4_160 = arith.constant 4 : index
    %c0_161 = arith.constant 0 : index
    %c0_162 = arith.constant 0 : index
    %184 = vector.load %arg3[%c4_160, %c0_161, %c0_162] : memref<8x4x512xf32, #tpu.memory_space<vmem>>, vector<1x4x512xf32>
    %185 = vector.shape_cast %184 : vector<1x4x512xf32> to vector<4x512xf32>
    %186 = arith.mulf %183, %185 : vector<4x512xf32>
    %c497_i32_163 = arith.constant 497 : i32
    %187 = tpu.dynamic_rotate %164 by %c497_i32_163 dim 1 : vector<4x512xf32>, i32 -> vector<4x512xf32>
    %c5_164 = arith.constant 5 : index
    %c0_165 = arith.constant 0 : index
    %c0_166 = arith.constant 0 : index
    %188 = vector.load %arg3[%c5_164, %c0_165, %c0_166] : memref<8x4x512xf32, #tpu.memory_space<vmem>>, vector<1x4x512xf32>
    %189 = vector.shape_cast %188 : vector<1x4x512xf32> to vector<4x512xf32>
    %190 = arith.mulf %187, %189 : vector<4x512xf32>
    %c496_i32_167 = arith.constant 496 : i32
    %191 = tpu.dynamic_rotate %164 by %c496_i32_167 dim 1 : vector<4x512xf32>, i32 -> vector<4x512xf32>
    %c6_168 = arith.constant 6 : index
    %c0_169 = arith.constant 0 : index
    %c0_170 = arith.constant 0 : index
    %192 = vector.load %arg3[%c6_168, %c0_169, %c0_170] : memref<8x4x512xf32, #tpu.memory_space<vmem>>, vector<1x4x512xf32>
    %193 = vector.shape_cast %192 : vector<1x4x512xf32> to vector<4x512xf32>
    %194 = arith.mulf %191, %193 : vector<4x512xf32>
    %c495_i32_171 = arith.constant 495 : i32
    %195 = tpu.dynamic_rotate %164 by %c495_i32_171 dim 1 : vector<4x512xf32>, i32 -> vector<4x512xf32>
    %c7_172 = arith.constant 7 : index
    %c0_173 = arith.constant 0 : index
    %c0_174 = arith.constant 0 : index
    %196 = vector.load %arg3[%c7_172, %c0_173, %c0_174] : memref<8x4x512xf32, #tpu.memory_space<vmem>>, vector<1x4x512xf32>
    %197 = vector.shape_cast %196 : vector<1x4x512xf32> to vector<4x512xf32>
    %198 = arith.mulf %195, %197 : vector<4x512xf32>
    %cst_175 = arith.constant 1.000000e+00 : f32
    %199 = vector.broadcast %cst_175 : f32 to vector<1x512xf32>
    %200 = tpu.concatenate %170, %174, %178, %182, %164, %186, %190, %194, %198, %199 in 0 : vector<4x512xf32>, vector<4x512xf32>, vector<4x512xf32>, vector<4x512xf32>, vector<4x512xf32>, vector<4x512xf32>, vector<4x512xf32>, vector<4x512xf32>, vector<4x512xf32>, vector<1x512xf32> -> vector<37x512xf32>
    %cst_176 = arith.constant dense<0.000000e+00> : vector<4x512xf32>
    %201 = tpu.matmul %166, %200, %cst_176 {dimension_numbers = #tpu.dot_dimension_numbers<[1], [0], [0], [1], [0, 0, 1, 1], [], []>} : vector<4x37xf32>, vector<37x512xf32>, vector<4x512xf32> -> vector<4x512xf32>
    %202 = arith.negf %201 : vector<4x512xf32>
    %203 = math.exp %202 : vector<4x512xf32>
    %cst_177 = arith.constant 1.000000e+00 : f32
    %204 = vector.broadcast %cst_177 : f32 to vector<4x512xf32>
    %205 = arith.addf %204, %203 : vector<4x512xf32>
    %206 = arith.divf %204, %205 : vector<4x512xf32>
    %207 = vector.extract_strided_slice %206 {offsets = [0, 0], sizes = [4, 256], strides = [1, 1]} : vector<4x512xf32> to vector<4x256xf32>
    %c0_178 = arith.constant 0 : index
    %c0_179 = arith.constant 0 : index
    %c0_180 = arith.constant 0 : index
    %208 = vector.load %arg7[%c0_178, %c0_179, %c0_180] : memref<2x4x256xf32, #tpu.memory_space<vmem>>, vector<1x4x256xf32>
    %209 = vector.shape_cast %208 : vector<1x4x256xf32> to vector<4x256xf32>
    %210 = vector.shape_cast %207 : vector<4x256xf32> to vector<1x4x256xf32>
    tpu.vector_store %arg7[%c0_178, %c0_179, %c0_180], %210 {strides = array<i32>} : memref<2x4x256xf32, #tpu.memory_space<vmem>>, vector<1x4x256xf32>,
    %211 = vector.extract_strided_slice %206 {offsets = [0, 256], sizes = [4, 256], strides = [1, 1]} : vector<4x512xf32> to vector<4x256xf32>
    %c1_181 = arith.constant 1 : index
    %c0_182 = arith.constant 0 : index
    %c0_183 = arith.constant 0 : index
    %212 = vector.load %arg7[%c1_181, %c0_182, %c0_183] : memref<2x4x256xf32, #tpu.memory_space<vmem>>, vector<1x4x256xf32>
    %213 = vector.shape_cast %212 : vector<1x4x256xf32> to vector<4x256xf32>
    %214 = vector.shape_cast %211 : vector<4x256xf32> to vector<1x4x256xf32>
    tpu.vector_store %arg7[%c1_181, %c0_182, %c0_183], %214 {strides = array<i32>} : memref<2x4x256xf32, #tpu.memory_space<vmem>>, vector<1x4x256xf32>,
    return
  }
  func.func @transform_0(%arg0: i32) -> (i32, i32, i32) {
    %c0_i32 = arith.constant 0 : i32
    %c0_i32_0 = arith.constant 0 : i32
    %c0_i32_1 = arith.constant 0 : i32
    return %arg0, %c0_i32, %c0_i32_0 : i32, i32, i32
  }
  func.func @transform_1(%arg0: i32) -> (i32, i32, i32) {
    %c0_i32 = arith.constant 0 : i32
    %c0_i32_0 = arith.constant 0 : i32
    %c0_i32_1 = arith.constant 0 : i32
    %c0_i32_2 = arith.constant 0 : i32
    return %c0_i32, %c0_i32_0, %c0_i32_1 : i32, i32, i32
  }
  func.func @transform_2(%arg0: i32) -> (i32, i32, i32) {
    %c0_i32 = arith.constant 0 : i32
    %c0_i32_0 = arith.constant 0 : i32
    %c0_i32_1 = arith.constant 0 : i32
    %c0_i32_2 = arith.constant 0 : i32
    return %c0_i32, %c0_i32_0, %c0_i32_1 : i32, i32, i32
  }
  func.func @transform_3(%arg0: i32) -> (i32, i32, i32) {
    %c0_i32 = arith.constant 0 : i32
    %c0_i32_0 = arith.constant 0 : i32
    %c0_i32_1 = arith.constant 0 : i32
    %c0_i32_2 = arith.constant 0 : i32
    return %c0_i32, %c0_i32_0, %c0_i32_1 : i32, i32, i32
  }
  func.func @transform_4(%arg0: i32) -> (i32, i32) {
    %c0_i32 = arith.constant 0 : i32
    %c0_i32_0 = arith.constant 0 : i32
    %c0_i32_1 = arith.constant 0 : i32
    return %c0_i32, %c0_i32_0 : i32, i32
  }
  func.func @transform_5(%arg0: i32) -> (i32, i32) {
    %c0_i32 = arith.constant 0 : i32
    %c0_i32_0 = arith.constant 0 : i32
    %c0_i32_1 = arith.constant 0 : i32
    return %c0_i32, %c0_i32_0 : i32, i32
  }
  func.func @transform_6(%arg0: i32) -> (i32, i32, i32) {
    %c0_i32 = arith.constant 0 : i32
    %c0_i32_0 = arith.constant 0 : i32
    %c0_i32_1 = arith.constant 0 : i32
    return %arg0, %c0_i32, %c0_i32_0 : i32, i32, i32
  }
}

</mosaic_0001>

<bundles_post_ra>
// kernel: dae_forward.1
= control target key start
LH: loop header
LB: loop body
LE: loop exit
PB: predicated region body
PF: predicated region fallthrough
CT: control target
= control target key end

     0   :  { %11 = vsyncpa [#allocation3], 0  ;;  %s3196_s0 = inlined_call_operand.vmem [shape: f32[2,4,256], index: 0, kind: input, shape index: {}]   ;;  %s3197_s1 = inlined_call_operand.vmem [shape: f32[5,4,37], index: 1, kind: input, shape index: {}]   ;;  %s3198_s2 = inlined_call_operand.vmem [shape: f32[8,4,512], index: 2, kind: input, shape index: {}]   ;;  %s3199_s3 = inlined_call_operand.vmem [shape: f32[8,4,128], index: 3, kind: input, shape index: {}]   ;;  %s3200_s4 = inlined_call_operand.hbm [shape: f32[512,128], index: 4, kind: input, shape index: {}]   ;;  %s3201_s5 = inlined_call_operand.hbm [shape: f32[128,512], index: 5, kind: input, shape index: {}]   ;;  %s3202_s6 = inlined_call_operand.vmem [shape: f32[2,4,256], index: 6, kind: output, shape index: {}]  }
   0x1   :  { %s25_s23 = sshll.u32 %s3200_s4, 4  ;;  %s26_s23 = int_to_ptr.hbm [resolvable:$true] %s25_s23 }
   0x2   :  { %12 = vsyncpa [#allocation5], 0  ;;  %s1956_s24 = smov [#allocation2]   ;;  %s38_s28 = sshll.u32 %s3201_s5, 4  ;;  %s39_s28 = int_to_ptr.hbm [resolvable:$true] %s38_s28 }
   0x3   :  { %s27_s25 = sshll.u32 %s1956_s24, 4  ;;  %s1957_s29 = smov 128   ;;  %s28_s25 = int_to_ptr.vmem [resolvable:$true] %s27_s25 }
   0x4   :  { %s1958_s30 = smov 8   ;;  %s1959_s7 = smov [#allocation4]  }
   0x5   :  { %33 = dma.hbm_to_vmem [thread:$0]  %s26_s23, 8192, %s28_s25, [#allocation3], %s1957_s29, %s1957_s29, %s1958_s30  }
   0x6   :  { %s40_s8 = sshll.u32 %s1959_s7, 4  ;;  %s1960_s9 = smov 512   ;;  %s41_s8 = int_to_ptr.vmem [resolvable:$true] %s40_s8 }
   0x7   :  { %s1961_s10 = smov 32  }
   0x8   :  { %46 = dma.hbm_to_vmem [thread:$0]  %s39_s28, 8192, %s41_s8, [#allocation5], %s1960_s9, %s1960_s9, %s1961_s10  }
   0x9   :  { %1952 = dma.done.wait [#allocation3], 8192  }
   0xa   :  { %1953 = vsyncadd [#allocation3], 4294959104 }
   0xb   :  { %1954 = dma.done.wait [#allocation5], 8192  }
   0xc   :  { %1955 = vsyncadd [#allocation5], 4294959104  ;;  %v55_v0 = vld [vmem:[%s3196_s0] sm:$0xff]  ;;  %v1810_v1 = vld [vmem:[%s3196_s0 + $0x8] sm:$0xff]  ;;  %s1962_s13 = smov 1   ;;  %s1963_s14 = smov 111   ;;  %v79_v50 = vlaneseq }
   0xd   :  { %59 = vst [vmem:[#allocation1] ss:$2 sm:$0xff] %v55_v0  ;;  %s1964_s15 = smov 112   ;;  %s1965_s0 = smov 127   ;;  %v2064_v6 = vld [vmem:[%s3198_s2 + $0x8] sm:$0xff]  ;;  %v2080_v9 = vld [vmem:[%s3198_s2 + $0x18] sm:$0xff] }
   0xe   :  { %s1966_s16 = smov 113   ;;  %s1967_s17 = smov 16   ;;  %92 = vst [vmem:[#allocation1 + $0x10] ss:$2 sm:$0xff] %v2064_v6  ;;  %v2092_v10 = vld [vmem:[%s3198_s2 + $0x28] sm:$0xff]  ;;  %v2108_v13 = vld [vmem:[%s3198_s2 + $0x38] sm:$0xff] }
   0xf   :  { %s1968_s20 = smov 15   ;;  %3211 = vst [vmem:[#allocation8_spill] sm:$0xff] %v2080_v9  ;;  %s1969_s23 = smov 17   ;;  %v2124_v16 = vld [vmem:[%s3198_s2 + $0x48] sm:$0xff]  ;;  %v2140_v19 = vld [vmem:[%s3198_s2 + $0x58] sm:$0xff]  ;;  %v2159_v23 = vld [vmem:[%s3198_s2] sm:$0xff] }
  0x10   :  { %3212 = vst [vmem:[#allocation9_spill] sm:$0xff] %v2092_v10  ;;  %v2154_v22 = vld [vmem:[%s3198_s2 + $0x68] sm:$0xff]  ;;  %v2170_v26 = vld [vmem:[%s3198_s2 + $0x78] sm:$0xff]  ;;  %v2175_v27 = vld [vmem:[%s3198_s2 + $0x10] sm:$0xff]  ;;  %v2242_v55 = vand.u32 127, %v79_v50  ;;  %vm384_vm3 = vcmask 1043456  }
  0x11   :  { %3213 = vst [vmem:[#allocation10_spill] sm:$0xff] %v2108_v13  ;;  %v2192_v34 = vld [vmem:[%s3198_s2 + $0x20] sm:$0xff]  ;;  %v2207_v40 = vld [vmem:[%s3198_s2 + $0x30] sm:$0xff]  ;;  %vm409_vm4 = vcmask 1044480   ;;  %vm405_vm10 = vcmask 302080   ;;  %s1970_s11 = smov 119  }
  0x12   :  { %3214 = vst [vmem:[#allocation11_spill] sm:$0xff] %v2124_v16  ;;  %v2226_v47 = vld [vmem:[%s3198_s2 + $0x40] sm:$0xff]  ;;  %vm311_vm0 = vcmp.lt.s32.totalorder %v2242_v55, 111  ;;  %v2250_v57 = vld [vmem:[%s3198_s2 + $0x50] sm:$0xff]  ;;  %vm212_vm1 = vcmp.lt.s32.totalorder %v2242_v55, 127  ;;  %vm278_vm2 = vcmp.lt.s32.totalorder %v2242_v55, 112 }
  0x13   :  { %3215 = vst [vmem:[#allocation12_spill] sm:$0xff] %v2140_v19  ;;  %vm245_vm5 = vcmp.lt.s32.totalorder %v2242_v55, 113  ;;  %vm179_vm6 = vcmp.lt.s32.totalorder %v2242_v55, 1  ;;  %vm146_vm7 = vcmp.lt.s32.totalorder %v2242_v55, 15  ;;  %vm113_vm8 = vcmp.lt.s32.totalorder %v2242_v55, 16  ;;  %s1971_s5 = smov 120  }
  0x14   :  { %v2023_v2 = vld.sshfl [vmem:[#allocation1 + $0x8] sm:$0xff pattern:$0x75316420]  ;;  %v2025_v3 = vld.sshfl [vmem:[#allocation1] sm:$0xff pattern:$0x75316420] }
  0x15   :  { %173 = vrot.lane.b32.xlu1 %v2023_v2, %s1962_s13  ;;  %303 = vrot.lane.b32.xlu0 %v2025_v3, %s1963_s14  ;;  %65 = vst [vmem:[#allocation1] ss:$2 sm:$0xff] %v1810_v1  ;;  %v2073_v7 = vld.sshfl [vmem:[#allocation1 + $0x10] sm:$0xff pattern:$0x75316420]  ;;  %vm81_vm9 = vcmp.lt.s32.totalorder %v2242_v55, 17 }
  0x16   :  { %270 = vrot.lane.b32.xlu2 %v2025_v3, %s1964_s15  ;;  %v2075_v8 = vld.sshfl [vmem:[#allocation1 + $0x18] sm:$0xff pattern:$0x75316420]  ;;  %3216 = vst [vmem:[#allocation13_spill] sm:$0xff] %v2154_v22  ;;  %s1972_s12 = smov 121   ;;  %s1973_s18 = smov 9  }
  0x17   :  { %125 = vst [vmem:[#allocation1 + $0x10] ss:$2 sm:$0xff] %v2080_v9  ;;  %s1974_s19 = smov 7  }
  0x18   :  { %3217 = vst [vmem:[#allocation14_spill] sm:$0xff] %v2175_v27 }
  0x19   :  { %3218 = vst [vmem:[#allocation15_spill] sm:$0xff] %v2192_v34 }
  0x1c   :  { %v2033_v4 = vld.sshfl [vmem:[#allocation1] sm:$0xff pattern:$0x75316420]  ;;  %v2041_v5 = vld.sshfl [vmem:[#allocation1 + $0x8] sm:$0xff pattern:$0x75316420] }
  0x1d   :  { %307 = vrot.lane.b32.xlu1 %v2033_v4, %s1963_s14  ;;  %274 = vrot.lane.b32.xlu0 %v2033_v4, %s1964_s15  ;;  %90 = vst [vmem:[#allocation1] ss:$2 sm:$0xff] %v2159_v23 }
  0x1e   :  { %208 = vrot.lane.b32.xlu2 %v2033_v4, %s1965_s0  ;;  %v2094_v11 = vld.sshfl [vmem:[#allocation1 + $0x10] sm:$0xff pattern:$0x75316420]  ;;  %v2096_v12 = vld.sshfl [vmem:[#allocation1 + $0x18] sm:$0xff pattern:$0x75316420] }
  0x1f   :  { %158 = vst [vmem:[#allocation1 + $0x10] ss:$2 sm:$0xff] %v2092_v10 }
  0x24   :  { %v2177_v28 = vld.sshfl [vmem:[#allocation1] sm:$0xff pattern:$0x75316420]  ;;  %v2179_v29 = vld.sshfl [vmem:[#allocation1 + $0x8] sm:$0xff pattern:$0x75316420] }
  0x25   :  { %309 = vrot.lane.b32.xlu1 %v2041_v5, %s1963_s14  ;;  %276 = vrot.lane.b32.xlu0 %v2041_v5, %s1964_s15  ;;  %123 = vst [vmem:[#allocation1] ss:$2 sm:$0xff] %v2175_v27 }
  0x26   :  { %210 = vrot.lane.b32.xlu2 %v2041_v5, %s1965_s0  ;;  %v2110_v14 = vld.sshfl [vmem:[#allocation1 + $0x10] sm:$0xff pattern:$0x75316420]  ;;  %v2112_v15 = vld.sshfl [vmem:[#allocation1 + $0x18] sm:$0xff pattern:$0x75316420] }
  0x27   :  { %191 = vst [vmem:[#allocation1 + $0x10] ss:$2 sm:$0xff] %v2108_v13 }
  0x2c   :  { %v2194_v36 = vld.sshfl [vmem:[#allocation1] sm:$0xff pattern:$0x75316420]  ;;  %v2197_v37 = vld.sshfl [vmem:[#allocation1 + $0x8] sm:$0xff pattern:$0x75316420] }
  0x2d   :  { %243 = vrot.lane.b32.xlu1 %v2041_v5, %s1966_s16  ;;  %241 = vrot.lane.b32.xlu0 %v2033_v4, %s1966_s16  ;;  %156 = vst [vmem:[#allocation1] ss:$2 sm:$0xff] %v2192_v34 }
  0x2e   :  { %175 = vrot.lane.b32.xlu2 %v2033_v4, %s1962_s13  ;;  %v2126_v17 = vld.sshfl [vmem:[#allocation1 + $0x10] sm:$0xff pattern:$0x75316420]  ;;  %v2128_v18 = vld.sshfl [vmem:[#allocation1 + $0x18] sm:$0xff pattern:$0x75316420] }
  0x2f   :  { %224 = vst [vmem:[#allocation1 + $0x10] ss:$2 sm:$0xff] %v2124_v16 }
  0x34   :  { %v2211_v42 = vld.sshfl [vmem:[#allocation1] sm:$0xff pattern:$0x75316420]  ;;  %v2214_v43 = vld.sshfl [vmem:[#allocation1 + $0x8] sm:$0xff pattern:$0x75316420] }
  0x35   :  { %237 = vrot.lane.b32.xlu1 %v2025_v3, %s1966_s16  ;;  %204 = vrot.lane.b32.xlu0 %v2025_v3, %s1965_s0  ;;  %189 = vst [vmem:[#allocation1] ss:$2 sm:$0xff] %v2207_v40 }
  0x36   :  { %107 = vrot.lane.b32.xlu2 %v2023_v2, %s1967_s17  ;;  %v2142_v20 = vld.sshfl [vmem:[#allocation1 + $0x10] sm:$0xff pattern:$0x75316420]  ;;  %v2144_v21 = vld.sshfl [vmem:[#allocation1 + $0x18] sm:$0xff pattern:$0x75316420] }
  0x37   :  { %257 = vst [vmem:[#allocation1 + $0x10] ss:$2 sm:$0xff] %v2140_v19 }
  0x3c   :  { %v2237_v53 = vld.sshfl [vmem:[#allocation1] sm:$0xff pattern:$0x75316420]  ;;  %v2239_v54 = vld.sshfl [vmem:[#allocation1 + $0x8] sm:$0xff pattern:$0x75316420] }
  0x3d   :  { %140 = vrot.lane.b32.xlu1 %v2023_v2, %s1968_s20  ;;  %109 = vrot.lane.b32.xlu0 %v2033_v4, %s1967_s17  ;;  %222 = vst [vmem:[#allocation1] ss:$2 sm:$0xff] %v2226_v47 }
  0x3e   :  { %142 = vrot.lane.b32.xlu2 %v2033_v4, %s1968_s20  ;;  %v2162_v24 = vld.sshfl [vmem:[#allocation1 + $0x10] sm:$0xff pattern:$0x75316420]  ;;  %v2164_v25 = vld.sshfl [vmem:[#allocation1 + $0x18] sm:$0xff pattern:$0x75316420] }
  0x3f   :  { %290 = vst [vmem:[#allocation1 + $0x10] ss:$2 sm:$0xff] %v2154_v22 }
  0x44   :  { %v2259_v62 = vld.sshfl [vmem:[#allocation1] sm:$0xff pattern:$0x75316420]  ;;  %v2261_v63 = vld.sshfl [vmem:[#allocation1 + $0x8] sm:$0xff pattern:$0x75316420] }
  0x45   :  { %73 = vrot.lane.b32.xlu1 %v2023_v2, %s1969_s23  ;;  %177 = vrot.lane.b32.xlu0 %v2041_v5, %s1962_s13  ;;  %255 = vst [vmem:[#allocation1] ss:$2 sm:$0xff] %v2250_v57 }
  0x46   :  { %75 = vrot.lane.b32.xlu2 %v2033_v4, %s1969_s23  ;;  %v2181_v30 = vld.sshfl [vmem:[#allocation1 + $0x10] sm:$0xff pattern:$0x75316420]  ;;  %v2183_v31 = vld.sshfl [vmem:[#allocation1 + $0x18] sm:$0xff pattern:$0x75316420] }
  0x47   :  { %323 = vst [vmem:[#allocation1 + $0x10] ss:$2 sm:$0xff] %v2170_v26 }
  0x4d   :  { %144 = vrot.lane.b32.xlu1 %v2041_v5, %s1968_s20  ;;  %111 = vrot.lane.b32.xlu0 %v2041_v5, %s1967_s17 }
  0x4e   :  { %77 = vrot.lane.b32.xlu2 %v2041_v5, %s1969_s23  ;;  %v326_v33 = vld.sshfl [vmem:[#allocation1 + $0x10] sm:$0xff pattern:$0x75316420]  ;;  %v327_v35 = vld.sshfl [vmem:[#allocation1 + $0x18] sm:$0xff pattern:$0x75316420] }
  0x4f   :  { %965 = vst [vmem:[#allocation1 + $0x10] ss:$2 sm:$0xff] %v2064_v6 }
  0x55   :  { %305 = vrot.lane.b32.xlu1 %v2023_v2, %s1963_s14  ;;  %272 = vrot.lane.b32.xlu0 %v2023_v2, %s1964_s15 }
  0x56   :  { %206 = vrot.lane.b32.xlu2 %v2023_v2, %s1965_s0  ;;  %v2202_v39 = vld.sshfl [vmem:[#allocation1 + $0x10] sm:$0xff pattern:$0x75316420]  ;;  %v2209_v41 = vld.sshfl [vmem:[#allocation1 + $0x18] sm:$0xff pattern:$0x75316420] }
  0x57   :  { %3219 = vst [vmem:[#allocation16_spill] sm:$0xff] %v2202_v39 }
  0x58   :  { %3220 = vst [vmem:[#allocation17_spill] sm:$0xff] %v2209_v41 }
  0x59   :  { %992 = vst [vmem:[#allocation1 + $0x10] ss:$2 sm:$0xff] %v2080_v9  ;;  %v551_v9 = vld [vmem:[#allocation2 + $0x168] sm:$0xff] }
  0x5d   :  { %171 = vrot.lane.b32.xlu1 %v2025_v3, %s1962_s13  ;;  %239 = vrot.lane.b32.xlu0 %v2023_v2, %s1966_s16 }
  0x5e   :  { %105 = vrot.lane.b32.xlu2 %v2025_v3, %s1967_s17 }
  0x60   :  { %v2228_v48 = vld.sshfl [vmem:[#allocation1 + $0x10] sm:$0xff pattern:$0x75316420]  ;;  %v2230_v49 = vld.sshfl [vmem:[#allocation1 + $0x18] sm:$0xff pattern:$0x75316420] }
  0x61   :  { %3221 = vst [vmem:[#allocation18_spill] sm:$0xff] %v2228_v48 }
  0x62   :  { %3222 = vst [vmem:[#allocation19_spill] sm:$0xff] %v2230_v49  ;;  %v2300_v49 = vld.sshfl [vmem:[#allocation1 + $0x8] sm:$0xff pattern:$0x75316420] }
  0x63   :  { %1019 = vst [vmem:[#allocation1 + $0x10] ss:$2 sm:$0xff] %v2092_v10 }
  0x65   :  { %71 = vrot.lane.b32.xlu1 %v2025_v3, %s1969_s23  ;;  %138 = vrot.lane.b32.xlu0 %v2025_v3, %s1968_s20 }
  0x6a   :  { %v2252_v58 = vld.sshfl [vmem:[#allocation1 + $0x10] sm:$0xff pattern:$0x75316420]  ;;  %v2254_v59 = vld.sshfl [vmem:[#allocation1 + $0x18] sm:$0xff pattern:$0x75316420] }
  0x6b   :  { %3223 = vst [vmem:[#allocation20_spill] sm:$0xff] %v2252_v58 }
  0x6c   :  { %3224 = vst [vmem:[#allocation21_spill] sm:$0xff] %v2254_v59 }
  0x6d   :  { %1046 = vst [vmem:[#allocation1 + $0x10] ss:$2 sm:$0xff] %v2108_v13 }
  0x70   :  { %v2185_v32 = vpop.permute.xlu2 %270 }
  0x78   :  { %v2199_v38 = vpop.permute.xlu2 %208 }
  0x80   :  { %v2221_v46 = vpop.permute.xlu2 %210 }
  0x81   :  { %v213_v39 = vsel %vm212_vm1, %v2199_v38, %v2221_v46 }
  0x87   :  { %v2216_v44 = vpop.permute.xlu1 %173  ;;  %v2218_v45 = vpop.permute.xlu0 %303 }
  0x88   :  { %v2244_v56 = vpop.permute.xlu2 %175 }
  0x8f   :  { %v2233_v51 = vpop.permute.xlu1 %307  ;;  %v2235_v52 = vpop.permute.xlu0 %274 }
  0x97   :  { %v310_v60 = vpop.permute.xlu1 %309  ;;  %v277_v61 = vpop.permute.xlu0 %276 }
  0x98   :  { %v312_v0 = vsel %vm311_vm0, %v2233_v51, %v310_v60  ;;  %v315_v1 = vsel %vm311_vm0, %v310_v60, %v2218_v45  ;;  %v279_v59 = vsel %vm278_vm2, %v2235_v52, %v277_v61  ;;  %v2279_v60 = vpop.permute.xlu2 %107 }
  0x99   :  { %v334_v50 = vmul.f32 %v326_v33, %v312_v0  ;;  %v335_v41 = vmul.f32 %v327_v35, %v315_v1  ;;  %v2287_v33 = vld [vmem:[%s3198_s2 + $0x60] sm:$0xff]  ;;  %v235_v35 = vmul.f32 %v2142_v20, %v213_v39  ;;  %v301_v0 = vmul.f32 %v2181_v30, %v279_v59  ;;  %v2291_v1 = vld.sshfl [vmem:[#allocation1 + $0x10] sm:$0xff pattern:$0x75316420] }
  0x9a   :  { %3225 = vst [vmem:[#allocation22_spill] sm:$0xff] %v2291_v1  ;;  %v282_v59 = vsel %vm278_vm2, %v277_v61, %v2185_v32  ;;  %v2314_v1 = vld [vmem:[%s3198_s2 + $0x70] sm:$0xff] }
  0x9b   :  { %v403_v58 = vsel %vm384_vm3, %v334_v50, 1.0  ;;  %v404_v48 = vsel %vm384_vm3, %v335_v41, 1.0  ;;  %v2293_v41 = vld.sshfl [vmem:[#allocation1 + $0x18] sm:$0xff pattern:$0x75316420]  ;;  %v366_v20 = vrot.slane %v235_v35, 4 }
  0x9c   :  { %1829 = vmatpush.msk.msra.mxu2 %vm409_vm4, %v403_v58  ;;  %1831 = vmatpush.msk.msra.mxu3 %vm409_vm4, %v404_v48  ;;  %3226 = vst [vmem:[#allocation23_spill] sm:$0xff] %v2293_v41  ;;  %v2298_v48 = vld.sshfl [vmem:[#allocation1] sm:$0xff pattern:$0x75316420]  ;;  %v378_v30 = vrot.slane %v301_v0, 4 }
  0x9d   :  { %1073 = vst [vmem:[#allocation1 + $0x10] ss:$2 sm:$0xff] %v2124_v16  ;;  %v302_v16 = vmul.f32 %v2183_v31, %v282_v59 }
  0x9e   :  { %288 = vst [vmem:[#allocation1] ss:$2 sm:$0xff] %v2287_v33 }
  0x9f   :  { %v244_v58 = vpop.permute.xlu1 %243  ;;  %v2296_v50 = vpop.permute.xlu0 %241 }
  0xa0   :  { %v246_v13 = vsel %vm245_vm5, %v2296_v50, %v244_v58 }
  0xa1   :  { %v268_v39 = vmul.f32 %v2162_v24, %v246_v13  ;;  %v395_v13 = vsel %vm384_vm3, %v2033_v4, %v366_v20  ;;  %v143_v24 = vpop.permute.xlu2 %142  ;;  %v379_v20 = vrot.slane %v302_v16, 4 }
  0xa3   :  { %v399_v41 = vsel %vm384_vm3, %v268_v39, %v378_v30 }
  0xa4   :  { %474 = vmatpush.msra.mxu2 %v399_v41  ;;  %v2317_v10 = vld.sshfl [vmem:[#allocation1 + $0x10] sm:$0xff pattern:$0x75316420]  ;;  %v2319_v35 = vld.sshfl [vmem:[#allocation1 + $0x18] sm:$0xff pattern:$0x75316420] }
  0xa5   :  { %3227 = vst [vmem:[#allocation24_spill] sm:$0xff] %v2317_v10  ;;  %v2329_v41 = vld.sshfl [vmem:[#allocation1] sm:$0xff pattern:$0x75316420] }
  0xa6   :  { %3228 = vst [vmem:[#allocation25_spill] sm:$0xff] %v2319_v35  ;;  %475 = vmatpush.msra.mxu2 %v395_v13  ;;  %v2331_v31 = vld.sshfl [vmem:[#allocation1 + $0x8] sm:$0xff pattern:$0x75316420]  ;;  %v181_v13 = vsel %vm179_vm6, %v2216_v44, %v2244_v56 }
  0xa7   :  { %1100 = vst [vmem:[#allocation1 + $0x10] ss:$2 sm:$0xff] %v2140_v19  ;;  %v2325_v61 = vpop.permute.xlu1 %237  ;;  %v2327_v0 = vpop.permute.xlu0 %204 }
  0xa8   :  { %v249_v30 = vsel %vm245_vm5, %v244_v58, %v2325_v61  ;;  %v216_v4 = vsel %vm212_vm1, %v2221_v46, %v2327_v0  ;;  %321 = vst [vmem:[#allocation1] ss:$2 sm:$0xff] %v2314_v1  ;;  %v202_v46 = vmul.f32 %v2126_v17, %v181_v13 }
  0xa9   :  { %v269_v39 = vmul.f32 %v2164_v25, %v249_v30  ;;  %v236_v59 = vmul.f32 %v2144_v21, %v216_v4  ;;  %v76_v17 = vpop.permute.xlu2 %75 }
  0xab   :  { %v367_v19 = vrot.slane %v236_v59, 4  ;;  %v400_v58 = vsel %vm384_vm3, %v269_v39, %v379_v20 }
  0xac   :  { %494 = vmatpush.msra.mxu3 %v400_v58 }
  0xad   :  { %v396_v21 = vsel %vm384_vm3, %v2041_v5, %v367_v19  ;;  %v354_v5 = vrot.slane %v202_v46, 4 }
  0xae   :  { %v2350_v35 = vld.sshfl [vmem:[#allocation1 + $0x10] sm:$0xff pattern:$0x75316420]  ;;  %v2352_v16 = vld.sshfl [vmem:[#allocation1 + $0x18] sm:$0xff pattern:$0x75316420]  ;;  %495 = vmatpush.msra.mxu3 %v396_v21 }
  0xaf   :  { %3229 = vst [vmem:[#allocation26_spill] sm:$0xff] %v2350_v35  ;;  %v2358_v25 = vpop.permute.xlu1 %140  ;;  %v110_v30 = vpop.permute.xlu0 %109  ;;  %v2360_v4 = vld.sshfl [vmem:[#allocation1] sm:$0xff pattern:$0x75316420] }
  0xb0   :  { %3230 = vst [vmem:[#allocation27_spill] sm:$0xff] %v2352_v16  ;;  %v2362_v20 = vld.sshfl [vmem:[#allocation1 + $0x8] sm:$0xff pattern:$0x75316420]  ;;  %v148_v39 = vsel %vm146_vm7, %v2358_v25, %v143_v24  ;;  %v115_v59 = vsel %vm113_vm8, %v2279_v60, %v110_v30  ;;  %v549_v35 = vld [vmem:[#allocation2 + $0x158] sm:$0xff] }
  0xb1   :  { %1127 = vst [vmem:[#allocation1 + $0x10] ss:$2 sm:$0xff] %v2154_v22  ;;  %v169_v19 = vmul.f32 %v2110_v14, %v148_v39  ;;  %v136_v58 = vmul.f32 %v2094_v11, %v115_v59  ;;  %v2397_v59 = vld [vmem:[%s3197_s1] sm:$0xf] }
  0xb2   :  { %963 = vst [vmem:[#allocation1] ss:$2 sm:$0xff] %v2159_v23 }
  0xb3   :  { %v391_v13 = vsel %vm384_vm3, %v169_v19, %v354_v5  ;;  %v342_v39 = vrot.slane %v136_v58, 4  ;;  %v2388_v19 = vpop.permute.xlu2 %77 }
  0xb4   :  { %476 = vmatpush.msra.mxu2 %v391_v13 }
  0xb7   :  { %v2375_v21 = vpop.permute.xlu1 %73  ;;  %v2377_v22 = vpop.permute.xlu0 %177 }
  0xb8   :  { %v83_v14 = vsel %vm81_vm9, %v2375_v21, %v76_v17  ;;  %v180_v11 = vsel %vm179_vm6, %v2244_v56, %v2377_v22 }
  0xb9   :  { %v2379_v16 = vld.sshfl [vmem:[#allocation1] sm:$0xff pattern:$0x75316420]  ;;  %v2381_v46 = vld.sshfl [vmem:[#allocation1 + $0x8] sm:$0xff pattern:$0x75316420]  ;;  %v103_v5 = vmul.f32 %v2073_v7, %v83_v14  ;;  %v203_v58 = vmul.f32 %v2128_v18, %v180_v11 }
  0xba   :  { %3231 = vst [vmem:[#allocation28_spill] sm:$0xff] %v2379_v16  ;;  %v82_v16 = vsel %vm81_vm9, %v76_v17, %v2388_v19  ;;  %v552_v11 = vld [vmem:[#allocation2 + $0x170] sm:$0xff] }
  0xbb   :  { %3232 = vst [vmem:[#allocation29_spill] sm:$0xff] %v2381_v46  ;;  %v387_v13 = vsel %vm384_vm3, %v103_v5, %v342_v39  ;;  %v553_v5 = vld [vmem:[#allocation2 + $0x178] sm:$0xff]  ;;  %v104_v17 = vmul.f32 %v2075_v8, %v82_v16  ;;  %v207_v10 = vpop.permute.xlu2 %206 }
  0xbc   :  { %990 = vst [vmem:[#allocation1] ss:$2 sm:$0xff] %v2175_v27  ;;  %477 = vmatpush.msra.mxu2 %v387_v13  ;;  %v355_v13 = vrot.slane %v203_v58, 4  ;;  %v569_v58 = vld [vmem:[#allocation2 + $0x1f8] sm:$0xff]  ;;  %v215_v8 = vsel %vm212_vm1, %v2327_v0, %v207_v10 }
  0xbd   :  { %1830 = vmatmul.msk.f32.vlgmr.msra.gmra.mxu2 %vm405_vm10, %v2397_v59  ;;  %v233_v0 = vmul.f32 %v2259_v62, %v215_v8  ;;  %v566_v62 = vld [vmem:[#allocation2 + $0x1e0] sm:$0xff] }
  0xbe   :  { %610 = vmatpush.msrb.mxu2 %v553_v5  ;;  %v548_v5 = vld [vmem:[#allocation2 + $0x150] sm:$0xff] }
  0xbf   :  { %v2403_v7 = vpop.permute.xlu1 %144  ;;  %v2405_v14 = vpop.permute.xlu0 %111 }
  0xc0   :  { %v147_v39 = vsel %vm146_vm7, %v143_v24, %v2403_v7  ;;  %v114_v18 = vsel %vm113_vm8, %v110_v30, %v2405_v14  ;;  %611 = vmatpush.msrb.mxu2 %v552_v11  ;;  %v550_v30 = vld [vmem:[#allocation2 + $0x160] sm:$0xff] }
  0xc2   :  { %612 = vmatpush.msrb.mxu2 %v551_v9 }
  0xc3   :  { %v2407_v46 = vld.sshfl [vmem:[#allocation1] sm:$0xff pattern:$0x75316420]  ;;  %v2409_v56 = vld.sshfl [vmem:[#allocation1 + $0x8] sm:$0xff pattern:$0x75316420] }
  0xc4   :  { %3233 = vst [vmem:[#allocation30_spill] sm:$0xff] %v2407_v46  ;;  %v170_v46 = vmul.f32 %v2112_v15, %v147_v39  ;;  %613 = vmatpush.msrb.mxu2 %v550_v30 }
  0xc5   :  { %3234 = vst [vmem:[#allocation31_spill] sm:$0xff] %v2409_v56  ;;  %v137_v56 = vmul.f32 %v2096_v12, %v114_v18  ;;  %v214_v12 = vsel %vm212_vm1, %v207_v10, %v2199_v38  ;;  %v568_v10 = vld [vmem:[#allocation2 + $0x1f0] sm:$0xff]  ;;  %v567_v18 = vld [vmem:[#allocation2 + $0x1e8] sm:$0xff] }
  0xc6   :  { %1017 = vst [vmem:[#allocation1] ss:$2 sm:$0xff] %v2192_v34  ;;  %v392_v24 = vsel %vm384_vm3, %v170_v46, %v355_v13  ;;  %v234_v39 = vmul.f32 %v2261_v63, %v214_v12  ;;  %614 = vmatpush.msrb.mxu2 %v549_v35  ;;  %v547_v63 = vld [vmem:[#allocation2 + $0x148] sm:$0xff]  ;;  %v565_v13 = vld [vmem:[#allocation2 + $0x1d8] sm:$0xff] }
  0xc7   :  { %v343_v27 = vrot.slane %v137_v56, 4  ;;  %496 = vmatpush.msra.mxu3 %v392_v24  ;;  %v306_v15 = vpop.permute.xlu1 %305  ;;  %v273_v16 = vpop.permute.xlu0 %272 }
  0xc8   :  { %v313_v9 = vsel %vm311_vm0, %v306_v15, %v2233_v51  ;;  %v280_v51 = vsel %vm278_vm2, %v273_v16, %v2235_v52  ;;  %615 = vmatpush.msrb.mxu2 %v548_v5  ;;  %v365_v35 = vrot.slane %v234_v39, 4 }
  0xc9   :  { %v388_v34 = vsel %vm384_vm3, %v104_v17, %v343_v27  ;;  %v314_v27 = vsel %vm311_vm0, %v2218_v45, %v306_v15  ;;  %v333_v38 = vmul.f32 %v2362_v20, %v313_v9  ;;  %v281_v45 = vsel %vm278_vm2, %v2185_v32, %v273_v16  ;;  %v546_v17 = vld [vmem:[#allocation2 + $0x140] sm:$0xff]  ;;  %v564_v16 = vld [vmem:[#allocation2 + $0x1d0] sm:$0xff]  ;;  %v106_v9 = vpop.permute.xlu2 %105 }
  0xca   :  { %497 = vmatpush.msra.mxu3 %v388_v34  ;;  %v332_v34 = vmul.f32 %v2360_v4, %v314_v27  ;;  %v299_v52 = vmul.f32 %v2329_v41, %v281_v45  ;;  %v300_v11 = vmul.f32 %v2331_v31, %v280_v51  ;;  %v364_v32 = vrot.slane %v233_v0, 4  ;;  %616 = vmatpush.msrb.mxu2 %v547_v63  ;;  %v563_v0 = vld [vmem:[#allocation2 + $0x1c8] sm:$0xff] }
  0xcb   :  { %1832 = vmatmul.msk.f32.vlgmr.msra.gmra.mxu3 %vm405_vm10, %v2397_v59  ;;  %v402_v20 = vsel %vm384_vm3, %v333_v38, 1.0  ;;  %v116_v51 = vsel %vm113_vm8, %v106_v9, %v2279_v60  ;;  %v394_v45 = vsel %vm384_vm3, %v2023_v2, %v365_v35  ;;  %v561_v60 = vld [vmem:[#allocation2 + $0x1b8] sm:$0xff] }
  0xcc   :  { %630 = vmatpush.msrb.mxu3 %v569_v58  ;;  %v401_v4 = vsel %vm384_vm3, %v332_v34, 1.0  ;;  %1827 = vmatpush.msk.msra.mxu1 %vm409_vm4, %v402_v20  ;;  %v376_v27 = vrot.slane %v299_v52, 4 }
  0xcd   :  { %v2432_v46 = vld.sshfl [vmem:[#allocation1] sm:$0xff pattern:$0x75316420]  ;;  %v2434_v56 = vld.sshfl [vmem:[#allocation1 + $0x8] sm:$0xff pattern:$0x75316420]  ;;  %1825 = vmatpush.msk.msra.mxu0 %vm409_vm4, %v401_v4  ;;  %617 = vmatpush.msrb.mxu2 %v546_v17 }
  0xce   :  { %1044 = vst [vmem:[#allocation1] ss:$2 sm:$0xff] %v2207_v40  ;;  %631 = vmatpush.msrb.mxu3 %v568_v10  ;;  %v377_v10 = vrot.slane %v300_v11, 4  ;;  %v543_v4 = vld [vmem:[#allocation2 + $0x128] sm:$0xff] }
  0xcf   :  { %v172_v58 = vpop.permute.xlu1 %171  ;;  %v240_v12 = vpop.permute.xlu0 %239 }
  0xd0   :  { %632 = vmatpush.msrb.mxu3 %v567_v18  ;;  %v182_v41 = vsel %vm179_vm6, %v172_v58, %v2216_v44  ;;  %v183_v31 = vsel %vm179_vm6, %v2377_v22, %v172_v58  ;;  %v247_v8 = vsel %vm245_vm5, %v240_v12, %v2296_v50  ;;  %v248_v15 = vsel %vm245_vm5, %v2325_v61, %v240_v12  ;;  %v545_v50 = vld [vmem:[#allocation2 + $0x138] sm:$0xff]  ;;  %v559_v58 = vld [vmem:[#allocation2 + $0x1a8] sm:$0xff] }
  0xd1   :  { %v266_v34 = vmul.f32 %v2298_v48, %v248_v15  ;;  %v267_v44 = vmul.f32 %v2300_v49, %v247_v8  ;;  %v200_v38 = vmul.f32 %v2237_v53, %v183_v31  ;;  %v201_v22 = vmul.f32 %v2239_v54, %v182_v41  ;;  %v562_v53 = vld [vmem:[#allocation2 + $0x1c0] sm:$0xff]  ;;  %v544_v54 = vld [vmem:[#allocation2 + $0x130] sm:$0xff]  ;;  %618 = vmatpush.msrb.mxu2 %v545_v50  ;;  %v541_v15 = vld [vmem:[#allocation2 + $0x118] sm:$0xff] }
  0xd2   :  { %633 = vmatpush.msrb.mxu3 %v566_v62  ;;  %v117_v49 = vsel %vm113_vm8, %v2405_v14, %v106_v9  ;;  %v393_v48 = vsel %vm384_vm3, %v2025_v3, %v364_v32  ;;  %v135_v14 = vmul.f32 %v2197_v37, %v116_v51  ;;  %v560_v32 = vld [vmem:[#allocation2 + $0x1b0] sm:$0xff]  ;;  %v517_v50 = vld [vmem:[#allocation2 + $0x58] sm:$0xff]  ;;  %v515_v51 = vld [vmem:[#allocation2 + $0x48] sm:$0xff] }
  0xd3   :  { %v397_v39 = vsel %vm384_vm3, %v266_v34, %v376_v27  ;;  %v398_v61 = vsel %vm384_vm3, %v267_v44, %v377_v10  ;;  %v352_v18 = vrot.slane %v200_v38, 4  ;;  %v353_v5 = vrot.slane %v201_v22, 4  ;;  %619 = vmatpush.msrb.mxu2 %v544_v54  ;;  %v536_v8 = vld [vmem:[#allocation2 + $0xf0] sm:$0xff]  ;;  %v557_v34 = vld [vmem:[#allocation2 + $0x198] sm:$0xff]  ;;  %v519_v44 = vld [vmem:[#allocation2 + $0x68] sm:$0xff] }
  0xd4   :  { %634 = vmatpush.msrb.mxu3 %v565_v13  ;;  %434 = vmatpush.msra.mxu0 %v397_v39  ;;  %v134_v20 = vmul.f32 %v2194_v36, %v117_v49  ;;  %v341_v12 = vrot.slane %v135_v14, 4  ;;  %v540_v10 = vld [vmem:[#allocation2 + $0x110] sm:$0xff]  ;;  %v535_v38 = vld [vmem:[#allocation2 + $0xe8] sm:$0xff]  ;;  %v518_v22 = vld [vmem:[#allocation2 + $0x60] sm:$0xff] }
  0xd5   :  { %v2461_v24 = vld.sshfl [vmem:[#allocation1] sm:$0xff pattern:$0x75316420]  ;;  %v2463_v30 = vld.sshfl [vmem:[#allocation1 + $0x8] sm:$0xff pattern:$0x75316420]  ;;  %454 = vmatpush.msra.mxu1 %v398_v61  ;;  %620 = vmatpush.msrb.mxu2 %v543_v4 }
  0xd6   :  { %1071 = vst [vmem:[#allocation1] ss:$2 sm:$0xff] %v2226_v47  ;;  %635 = vmatpush.msrb.mxu3 %v564_v16  ;;  %435 = vmatpush.msra.mxu0 %v393_v48  ;;  %v340_v41 = vrot.slane %v134_v20, 4  ;;  %v558_v16 = vld [vmem:[#allocation2 + $0x1a0] sm:$0xff]  ;;  %v516_v39 = vld [vmem:[#allocation2 + $0x50] sm:$0xff]  ;;  %v531_v49 = vld [vmem:[#allocation2 + $0xc8] sm:$0xff] }
  0xd7   :  { %455 = vmatpush.msra.mxu1 %v394_v45  ;;  %v72_v3 = vpop.permute.xlu1 %71  ;;  %v139_v52 = vpop.permute.xlu0 %138  ;;  %v532_v61 = vld [vmem:[#allocation2 + $0xd0] sm:$0xff]  ;;  %v530_v54 = vld [vmem:[#allocation2 + $0xc0] sm:$0xff]  ;;  %v513_v48 = vld [vmem:[#allocation2 + $0x38] sm:$0xff] }
  0xd8   :  { %636 = vmatpush.msrb.mxu3 %v563_v0  ;;  %v84_v2 = vsel %vm81_vm9, %v72_v3, %v2375_v21  ;;  %v85_v37 = vsel %vm81_vm9, %v2388_v19, %v72_v3  ;;  %v149_v36 = vsel %vm146_vm7, %v139_v52, %v2358_v25  ;;  %v150_v11 = vsel %vm146_vm7, %v2403_v7, %v139_v52  ;;  %v542_v19 = vld [vmem:[#allocation2 + $0x120] sm:$0xff]  ;;  %v537_v7 = vld [vmem:[#allocation2 + $0xf8] sm:$0xff]  ;;  %v527_v4 = vld [vmem:[#allocation2 + $0xa8] sm:$0xff] }
  0xd9   :  { %v101_v35 = vmul.f32 %v2177_v28, %v85_v37  ;;  %v102_v13 = vmul.f32 %v2179_v29, %v84_v2  ;;  %v167_v17 = vmul.f32 %v2211_v42, %v150_v11  ;;  %v168_v21 = vmul.f32 %v2214_v43, %v149_v36  ;;  %v521_v42 = vld [vmem:[#allocation2 + $0x78] sm:$0xff]  ;;  %v520_v43 = vld [vmem:[#allocation2 + $0x70] sm:$0xff]  ;;  %621 = vmatpush.msrb.mxu2 %v542_v19  ;;  %v534_v0 = vld [vmem:[#allocation2 + $0xe0] sm:$0xff] }
  0xda   :  { %637 = vmatpush.msrb.mxu3 %v562_v53  ;;  %v514_v53 = vld [vmem:[#allocation2 + $0x40] sm:$0xff]  ;;  %v529_v45 = vld [vmem:[#allocation2 + $0xb8] sm:$0xff]  ;;  %v539_v2 = vld [vmem:[#allocation2 + $0x108] sm:$0xff] }
  0xdb   :  { %v389_v25 = vsel %vm384_vm3, %v167_v17, %v352_v18  ;;  %v390_v31 = vsel %vm384_vm3, %v168_v21, %v353_v5  ;;  %v385_v28 = vsel %vm384_vm3, %v101_v35, %v340_v41  ;;  %v386_v29 = vsel %vm384_vm3, %v102_v13, %v341_v12  ;;  %622 = vmatpush.msrb.mxu2 %v541_v15  ;;  %v512_v18 = vld [vmem:[#allocation2 + $0x30] sm:$0xff]  ;;  %v510_v14 = vld [vmem:[#allocation2 + $0x20] sm:$0xff]  ;;  %v509_v3 = vld [vmem:[#allocation2 + $0x18] sm:$0xff] }
  0xdc   :  { %638 = vmatpush.msrb.mxu3 %v561_v60  ;;  %436 = vmatpush.msra.mxu0 %v389_v25  ;;  %v528_v5 = vld [vmem:[#allocation2 + $0xb0] sm:$0xff]  ;;  %v511_v60 = vld [vmem:[#allocation2 + $0x28] sm:$0xff]  ;;  %v526_v20 = vld [vmem:[#allocation2 + $0xa0] sm:$0xff] }
  0xdd   :  { %v2496_v62 = vld.sshfl [vmem:[#allocation1] sm:$0xff pattern:$0x75316420]  ;;  %v2498_v63 = vld.sshfl [vmem:[#allocation1 + $0x8] sm:$0xff pattern:$0x75316420]  ;;  %456 = vmatpush.msra.mxu1 %v390_v31  ;;  %623 = vmatpush.msrb.mxu2 %v540_v10 }
  0xde   :  { %1098 = vst [vmem:[#allocation1] ss:$2 sm:$0xff] %v2250_v57  ;;  %639 = vmatpush.msrb.mxu3 %v560_v32  ;;  %437 = vmatpush.msra.mxu0 %v385_v28  ;;  %v525_v52 = vld [vmem:[#allocation2 + $0x98] sm:$0xff]  ;;  %v556_v37 = vld [vmem:[#allocation2 + $0x190] sm:$0xff]  ;;  %v538_v32 = vld [vmem:[#allocation2 + $0x100] sm:$0xff] }
  0xdf   :  { %457 = vmatpush.msra.mxu1 %v386_v29  ;;  %1826 = vmatmul.msk.f32.vlgmr.msra.gmra.mxu0 %vm405_vm10, %v2397_v59  ;;  %v508_v36 = vld [vmem:[#allocation2 + $0x10] sm:$0xff]  ;;  %v555_v35 = vld [vmem:[#allocation2 + $0x188] sm:$0xff]  ;;  %v554_v21 = vld [vmem:[#allocation2 + $0x180] sm:$0xff] }
  0xe0   :  { %640 = vmatpush.msrb.mxu3 %v559_v58  ;;  %1828 = vmatmul.msk.f32.vlgmr.msra.gmra.mxu1 %vm405_vm10, %v2397_v59  ;;  %v533_v59 = vld [vmem:[#allocation2 + $0xd8] sm:$0xff]  ;;  %v524_v11 = vld [vmem:[#allocation2 + $0x90] sm:$0xff]  ;;  %v507_v13 = vld [vmem:[#allocation2 + $0x8] sm:$0xff] }
  0xe1   :  { %570 = vmatpush.msrb.mxu0 %v521_v42  ;;  %590 = vmatpush.msrb.mxu1 %v537_v7  ;;  %v523_v17 = vld [vmem:[#allocation2 + $0x88] sm:$0xff]  ;;  %v506_v19 = vld [vmem:[#allocation2] sm:$0xff] }
  0xe2   :  { %641 = vmatpush.msrb.mxu3 %v558_v16  ;;  %624 = vmatpush.msrb.mxu2 %v539_v2  ;;  %v522_v58 = vld [vmem:[#allocation2 + $0x80] sm:$0xff] }
  0xe3   :  { %571 = vmatpush.msrb.mxu0 %v520_v43  ;;  %591 = vmatpush.msrb.mxu1 %v536_v8 }
  0xe4   :  { %642 = vmatpush.msrb.mxu3 %v557_v34  ;;  %625 = vmatpush.msrb.mxu2 %v538_v32 }
  0xe5   :  { %v2521_v9 = vld.sshfl [vmem:[#allocation1] sm:$0xff pattern:$0x75316420]  ;;  %v2523_v27 = vld.sshfl [vmem:[#allocation1 + $0x8] sm:$0xff pattern:$0x75316420]  ;;  %572 = vmatpush.msrb.mxu0 %v519_v44  ;;  %592 = vmatpush.msrb.mxu1 %v535_v38 }
  0xe6   :  { %1125 = vst [vmem:[#allocation1] ss:$2 sm:$0xff] %v2287_v33  ;;  %643 = vmatpush.msrb.mxu3 %v556_v37  ;;  %v2577_v37 = vld [vmem:[%s3199_s3 + $0x4] sm:$0xf] }
  0xe7   :  { %573 = vmatpush.msrb.mxu0 %v518_v22  ;;  %593 = vmatpush.msrb.mxu1 %v534_v0  ;;  %v2541_v22 = vld [vmem:[%s3199_s3 + $0x18] sm:$0xf]  ;;  %v2546_v0 = vld [vmem:[%s3199_s3 + $0x14] sm:$0xf] }
  0xe8   :  { %644 = vmatpush.msrb.mxu3 %v555_v35 }
  0xe9   :  { %574 = vmatpush.msrb.mxu0 %v517_v50  ;;  %594 = vmatpush.msrb.mxu1 %v533_v59  ;;  %v2551_v59 = vld [vmem:[%s3199_s3 + $0x10] sm:$0xf] }
  0xea   :  { %645 = vmatpush.msrb.mxu3 %v554_v21 }
  0xeb   :  { %575 = vmatpush.msrb.mxu0 %v516_v39  ;;  %595 = vmatpush.msrb.mxu1 %v532_v61  ;;  %v1840_v39 = vld [vmem:[%s3199_s3 + $0x1c] sm:$0xf] }
  0xed   :  { %576 = vmatpush.msrb.mxu0 %v515_v51  ;;  %596 = vmatpush.msrb.mxu1 %v531_v49 }
  0xef   :  { %577 = vmatpush.msrb.mxu0 %v514_v53  ;;  %597 = vmatpush.msrb.mxu1 %v530_v54 }
  0xf1   :  { %578 = vmatpush.msrb.mxu0 %v513_v48  ;;  %598 = vmatpush.msrb.mxu1 %v529_v45 }
  0xf3   :  { %579 = vmatpush.msrb.mxu0 %v512_v18  ;;  %599 = vmatpush.msrb.mxu1 %v528_v5 }
  0xf5   :  { %580 = vmatpush.msrb.mxu0 %v511_v60  ;;  %600 = vmatpush.msrb.mxu1 %v527_v4  ;;  %v2565_v4 = vld [vmem:[%s3199_s3 + $0xc] sm:$0xf] }
  0xf7   :  { %581 = vmatpush.msrb.mxu0 %v510_v14  ;;  %601 = vmatpush.msrb.mxu1 %v526_v20  ;;  %v2571_v20 = vld [vmem:[%s3199_s3 + $0x8] sm:$0xf] }
  0xf9   :  { %582 = vmatpush.msrb.mxu0 %v509_v3  ;;  %602 = vmatpush.msrb.mxu1 %v525_v52 }
  0xfb   :  { %583 = vmatpush.msrb.mxu0 %v508_v36  ;;  %603 = vmatpush.msrb.mxu1 %v524_v11 }
  0xfd   :  { %584 = vmatpush.msrb.mxu0 %v507_v13  ;;  %604 = vmatpush.msrb.mxu1 %v523_v17  ;;  %v2585_v17 = vld [vmem:[%s3199_s3] sm:$0xf] }
  0xff   :  { %585 = vmatpush.msrb.mxu0 %v506_v19  ;;  %605 = vmatpush.msrb.mxu1 %v522_v58 }
 0x140   :  { %v479_v12 = vpop.f32.mrf.mxu2 }
 0x141   :  { %v504_v41 = vmax.f32 %v479_v12, 0.0  ;;  %v1833_v12 = vld [vmem:[%s3197_s1 + $0x4] sm:$0xf] }
 0x143   :  { %626 = vmatmul.f32.vlgmr.msrb.gmra.mxu2 %v504_v41 }
 0x14e   :  { %v499_v25 = vpop.f32.mrf.mxu3 }
 0x14f   :  { %v505_v31 = vmax.f32 %v499_v25, 0.0 }
 0x151   :  { %646 = vmatmul.f32.vlgmr.msrb.gmra.mxu3 %v505_v31 }
 0x15c   :  { %v439_v28 = vpop.f32.mrf.mxu0 }
 0x15d   :  { %v459_v29 = vpop.f32.mrf.mxu1  ;;  %v502_v42 = vmax.f32 %v439_v28, 0.0 }
 0x15e   :  { %v503_v7 = vmax.f32 %v459_v29, 0.0 }
 0x15f   :  { %586 = vmatmul.f32.vlgmr.msrb.gmra.mxu0 %v502_v42 }
 0x160   :  { %606 = vmatmul.f32.vlgmr.msrb.gmra.mxu1 %v503_v7  ;;  %v865_v7 = vld [vmem:[#allocation4 + $0x1e0] sm:$0xff] }
 0x161   :  { %869 = vmatpush.msra.mxu2 %v865_v7  ;;  %v826_v7 = vld [vmem:[#allocation4 + $0xa8] sm:$0xff] }
 0x1c6   :  { %v627_v43 = vpop.f32.mrf.mxu2 }
 0x1d4   :  { %v647_v10 = vpop.f32.mrf.mxu3 }
 0x1dc   :  { %v587_v8 = vpop.f32.mrf.mxu0 }
 0x1dd   :  { %v607_v15 = vpop.f32.mrf.mxu1 }
 0x1de   :  { %v608_v16 = vadd.f32 %v607_v15, %v587_v8  ;;  %v867_v8 = vld [vmem:[#allocation4 + $0x1f0] sm:$0xff]  ;;  %v861_v15 = vld [vmem:[#allocation4 + $0x1c0] sm:$0xff] }
 0x1df   :  { %870 = vmatpush.msra.mxu2 %v861_v15  ;;  %v821_v15 = vld [vmem:[#allocation4 + $0x80] sm:$0xff] }
 0x1e0   :  { %v628_v34 = vadd.f32 %v627_v43, %v608_v16  ;;  %v866_v43 = vld [vmem:[#allocation4 + $0x1e8] sm:$0xff] }
 0x1e1   :  { %889 = vmatpush.msra.mxu3 %v866_v43  ;;  %v862_v16 = vld [vmem:[#allocation4 + $0x1c8] sm:$0xff]  ;;  %v827_v43 = vld [vmem:[#allocation4 + $0xb0] sm:$0xff] }
 0x1e2   :  { %v648_v44 = vadd.f32 %v647_v10, %v628_v34  ;;  %v863_v10 = vld [vmem:[#allocation4 + $0x1d0] sm:$0xff]  ;;  %v857_v34 = vld [vmem:[#allocation4 + $0x1a0] sm:$0xff] }
 0x1e3   :  { %890 = vmatpush.msra.mxu3 %v862_v16  ;;  %871 = vmatpush.msra.mxu2 %v857_v34  ;;  %v822_v16 = vld [vmem:[#allocation4 + $0x88] sm:$0xff] }
 0x1e4   :  { %671 = vrot.lane.b32.xlu1 %v648_v44, %s1965_s0  ;;  %686 = vrot.lane.b32.xlu0 %v648_v44, %s1970_s11 }
 0x1e5   :  { %681 = vrot.lane.b32.xlu2 %v648_v44, %s1971_s5 }
 0x1ec   :  { %656 = vrot.lane.b32.xlu1 %v648_v44, %s1958_s30  ;;  %666 = vrot.lane.b32.xlu0 %v648_v44, %s1962_s13 }
 0x1ed   :  { %676 = vrot.lane.b32.xlu2 %v648_v44, %s1972_s12 }
 0x1f4   :  { %652 = vrot.lane.b32.xlu0 %v648_v44, %s1973_s18 }
 0x1f5   :  { %661 = vrot.lane.b32.xlu2 %v648_v44, %s1974_s19 }
 0x23f   :  { %v682_v38 = vpop.permute.xlu2 %681 }
 0x240   :  { %v685_v61 = vmul.f32 %v2541_v22, %v682_v38  ;;  %v859_v38 = vld [vmem:[#allocation4 + $0x1b0] sm:$0xff] }
 0x242   :  { %v701_v45 = vrot.slane %v685_v61, 4  ;;  %v855_v61 = vld [vmem:[#allocation4 + $0x190] sm:$0xff] }
 0x247   :  { %v677_v50 = vpop.permute.xlu2 %676 }
 0x248   :  { %v680_v53 = vmul.f32 %v2546_v0, %v677_v50  ;;  %v853_v50 = vld [vmem:[#allocation4 + $0x180] sm:$0xff] }
 0x249   :  { %872 = vmatpush.msra.mxu2 %v853_v50  ;;  %v818_v50 = vld [vmem:[#allocation4 + $0x68] sm:$0xff] }
 0x24a   :  { %v706_v60 = vsel %vm384_vm3, %v680_v53, %v701_v45  ;;  %v851_v53 = vld [vmem:[#allocation4 + $0x170] sm:$0xff]  ;;  %v845_v45 = vld [vmem:[#allocation4 + $0x140] sm:$0xff] }
 0x24f   :  { %v662_v3 = vpop.permute.xlu2 %661 }
 0x250   :  { %v665_v11 = vmul.f32 %v2571_v20, %v662_v3  ;;  %v843_v3 = vld [vmem:[#allocation4 + $0x130] sm:$0xff] }
 0x256   :  { %v672_v51 = vpop.permute.xlu1 %671  ;;  %v687_v49 = vpop.permute.xlu0 %686 }
 0x257   :  { %v675_v54 = vmul.f32 %v2551_v59, %v672_v51  ;;  %v690_v48 = vmul.f32 %v1840_v39, %v687_v49  ;;  %v849_v51 = vld [vmem:[#allocation4 + $0x160] sm:$0xff]  ;;  %v850_v49 = vld [vmem:[#allocation4 + $0x168] sm:$0xff] }
 0x258   :  { %873 = vmatpush.msra.mxu2 %v849_v51 }
 0x259   :  { %v698_v18 = vrot.slane %v675_v54, 4  ;;  %v707_v5 = vsel %vm384_vm3, %v690_v48, 1.0 }
 0x25a   :  { %1841 = vmatpush.msk.msra.mxu0 %vm409_vm4, %v707_v5  ;;  %v847_v5 = vld [vmem:[#allocation4 + $0x150] sm:$0xff]  ;;  %874 = vmatpush.msra.mxu2 %v845_v45 }
 0x25b   :  { %v705_v14 = vsel %vm384_vm3, %v648_v44, %v698_v18  ;;  %v858_v44 = vld [vmem:[#allocation4 + $0x1a8] sm:$0xff] }
 0x25c   :  { %726 = vmatpush.msra.mxu0 %v706_v60  ;;  %891 = vmatpush.msra.mxu3 %v858_v44  ;;  %v846_v18 = vld [vmem:[#allocation4 + $0x148] sm:$0xff]  ;;  %v841_v60 = vld [vmem:[#allocation4 + $0x120] sm:$0xff] }
 0x25d   :  { %875 = vmatpush.msra.mxu2 %v841_v60  ;;  %v868_v60 = vld [vmem:[#allocation4 + $0x1f8] sm:$0xff] }
 0x25e   :  { %v667_v52 = vpop.permute.xlu0 %666  ;;  %727 = vmatpush.msra.mxu0 %v705_v14  ;;  %v657_v36 = vpop.permute.xlu1 %656  ;;  %v842_v14 = vld [vmem:[#allocation4 + $0x128] sm:$0xff] }
 0x25f   :  { %v670_v2 = vmul.f32 %v2565_v4, %v667_v52  ;;  %v660_v35 = vmul.f32 %v2577_v37, %v657_v36  ;;  %v837_v52 = vld [vmem:[#allocation4 + $0x100] sm:$0xff]  ;;  %v839_v36 = vld [vmem:[#allocation4 + $0x110] sm:$0xff] }
 0x260   :  { %876 = vmatpush.msra.mxu2 %v837_v52  ;;  %v848_v52 = vld [vmem:[#allocation4 + $0x158] sm:$0xff] }
 0x261   :  { %v695_v32 = vrot.slane %v670_v2, 4  ;;  %v692_v19 = vrot.slane %v660_v35, 4  ;;  %v838_v2 = vld [vmem:[#allocation4 + $0x108] sm:$0xff] }
 0x263   :  { %v704_v13 = vsel %vm384_vm3, %v665_v11, %v695_v32 }
 0x264   :  { %728 = vmatpush.msra.mxu0 %v704_v13  ;;  %v833_v13 = vld [vmem:[#allocation4 + $0xe0] sm:$0xff] }
 0x265   :  { %877 = vmatpush.msra.mxu2 %v833_v13  ;;  %v824_v13 = vld [vmem:[#allocation4 + $0x98] sm:$0xff] }
 0x266   :  { %v653_v21 = vpop.permute.xlu0 %652 }
 0x267   :  { %v655_v58 = vmul.f32 %v2585_v17, %v653_v21  ;;  %v834_v21 = vld [vmem:[#allocation4 + $0xe8] sm:$0xff] }
 0x269   :  { %v703_v41 = vsel %vm384_vm3, %v655_v58, %v692_v19  ;;  %v835_v19 = vld [vmem:[#allocation4 + $0xf0] sm:$0xff] }
 0x26a   :  { %729 = vmatpush.msra.mxu0 %v703_v41  ;;  %v830_v41 = vld [vmem:[#allocation4 + $0xc8] sm:$0xff] }
 0x26b   :  { %1842 = vmatmul.msk.f32.vlgmr.msra.gmra.mxu0 %vm405_vm10, %v1833_v12  ;;  %v829_v12 = vld [vmem:[#allocation4 + $0xc0] sm:$0xff] }
 0x26c   :  { %909 = vmatpush.msrb.mxu0 %v867_v8  ;;  %878 = vmatpush.msra.mxu2 %v829_v12  ;;  %v810_v12 = vld [vmem:[#allocation4 + $0x28] sm:$0xff] }
 0x26e   :  { %910 = vmatpush.msrb.mxu0 %v863_v10  ;;  %v823_v10 = vld [vmem:[#allocation4 + $0x90] sm:$0xff] }
 0x270   :  { %911 = vmatpush.msrb.mxu0 %v859_v38  ;;  %v817_v38 = vld [vmem:[#allocation4 + $0x60] sm:$0xff] }
 0x272   :  { %912 = vmatpush.msrb.mxu0 %v855_v61 }
 0x274   :  { %913 = vmatpush.msrb.mxu0 %v851_v53  ;;  %v814_v53 = vld [vmem:[#allocation4 + $0x48] sm:$0xff] }
 0x276   :  { %914 = vmatpush.msrb.mxu0 %v847_v5 }
 0x278   :  { %915 = vmatpush.msrb.mxu0 %v843_v3  ;;  %v852_v3 = vld [vmem:[#allocation4 + $0x178] sm:$0xff] }
 0x27a   :  { %916 = vmatpush.msrb.mxu0 %v839_v36  ;;  %v840_v36 = vld [vmem:[#allocation4 + $0x118] sm:$0xff] }
 0x27c   :  { %917 = vmatpush.msrb.mxu0 %v835_v19  ;;  %v816_v19 = vld [vmem:[#allocation4 + $0x58] sm:$0xff] }
 0x2e8   :  { %v731_v25 = vpop.f32.mrf.mxu0 }
 0x2e9   :  { %v2593_v31 = vmax.f32 %v731_v25, 0.0  ;;  %v831_v25 = vld [vmem:[#allocation4 + $0xd0] sm:$0xff] }
 0x2ea   :  { %918 = vmatpush.msrb.mxu0 %v831_v25  ;;  %v812_v25 = vld [vmem:[#allocation4 + $0x38] sm:$0xff] }
 0x2eb   :  { %749 = vrot.lane.b32.xlu0 %v2593_v31, %s1965_s0  ;;  %758 = vrot.lane.b32.xlu2 %v2593_v31, %s1970_s11 }
 0x2ec   :  { %755 = vrot.lane.b32.xlu1 %v2593_v31, %s1971_s5  ;;  %919 = vmatpush.msrb.mxu0 %v827_v43 }
 0x2ee   :  { %920 = vmatpush.msrb.mxu0 %v823_v10  ;;  %v1130_v10 = vld.sshfl [vmem:[#allocation1 + $0x10] sm:$0xff pattern:$0x75316420] }
 0x2f3   :  { %740 = vrot.lane.b32.xlu0 %v2593_v31, %s1958_s30  ;;  %746 = vrot.lane.b32.xlu2 %v2593_v31, %s1962_s13 }
 0x2f4   :  { %752 = vrot.lane.b32.xlu1 %v2593_v31, %s1972_s12 }
 0x2fb   :  { %737 = vrot.lane.b32.xlu2 %v2593_v31, %s1973_s18 }
 0x2fc   :  { %743 = vrot.lane.b32.xlu1 %v2593_v31, %s1974_s19 }
 0x345   :  { %v759_v28 = vpop.permute.xlu2 %758 }
 0x346   :  { %v760_v29 = vmul.f32 %v1840_v39, %v759_v28  ;;  %v854_v39 = vld [vmem:[#allocation4 + $0x188] sm:$0xff] }
 0x347   :  { %892 = vmatpush.msra.mxu3 %v854_v39  ;;  %v819_v39 = vld [vmem:[#allocation4 + $0x70] sm:$0xff] }
 0x348   :  { %v777_v42 = vsel %vm384_vm3, %v760_v29, 1.0  ;;  %921 = vmatpush.msrb.mxu0 %v819_v39 }
 0x349   :  { %1844 = vmatpush.msk.msra.mxu1 %vm409_vm4, %v777_v42  ;;  %893 = vmatpush.msra.mxu3 %v850_v49  ;;  %v825_v42 = vld [vmem:[#allocation4 + $0xa0] sm:$0xff] }
 0x34a   :  { %879 = vmatpush.msra.mxu2 %v825_v42  ;;  %v813_v49 = vld [vmem:[#allocation4 + $0x40] sm:$0xff] }
 0x34b   :  { %894 = vmatpush.msra.mxu3 %v846_v18  ;;  %v1843_v18 = vld [vmem:[%s3197_s1 + $0x8] sm:$0xf] }
 0x34c   :  { %880 = vmatpush.msra.mxu2 %v821_v15 }
 0x34d   :  { %895 = vmatpush.msra.mxu3 %v842_v14  ;;  %v747_v35 = vpop.permute.xlu2 %746  ;;  %v860_v14 = vld [vmem:[#allocation4 + $0x1b8] sm:$0xff] }
 0x34e   :  { %v748_v34 = vmul.f32 %v2565_v4, %v747_v35  ;;  %881 = vmatpush.msra.mxu2 %v817_v38  ;;  %v815_v4 = vld [vmem:[#allocation4 + $0x50] sm:$0xff]  ;;  %v828_v35 = vld [vmem:[#allocation4 + $0xb8] sm:$0xff] }
 0x34f   :  { %896 = vmatpush.msra.mxu3 %v838_v2  ;;  %922 = vmatpush.msrb.mxu0 %v815_v4  ;;  %v844_v2 = vld [vmem:[#allocation4 + $0x138] sm:$0xff] }
 0x350   :  { %882 = vmatpush.msra.mxu2 %v813_v49 }
 0x351   :  { %897 = vmatpush.msra.mxu3 %v834_v21  ;;  %v820_v21 = vld [vmem:[#allocation4 + $0x78] sm:$0xff] }
 0x353   :  { %898 = vmatpush.msra.mxu3 %v830_v41  ;;  %v811_v41 = vld [vmem:[#allocation4 + $0x30] sm:$0xff] }
 0x354   :  { %923 = vmatpush.msrb.mxu0 %v811_v41 }
 0x355   :  { %899 = vmatpush.msra.mxu3 %v826_v7  ;;  %v738_v61 = vpop.permute.xlu2 %737 }
 0x357   :  { %900 = vmatpush.msra.mxu3 %v822_v16 }
 0x359   :  { %901 = vmatpush.msra.mxu3 %v818_v50 }
 0x35b   :  { %902 = vmatpush.msra.mxu3 %v814_v53 }
 0x35d   :  { %v750_v54 = vpop.permute.xlu0 %749  ;;  %903 = vmatpush.msra.mxu3 %v810_v12 }
 0x35e   :  { %v756_v48 = vpop.permute.xlu1 %755  ;;  %v751_v11 = vmul.f32 %v2551_v59, %v750_v54  ;;  %v765_v54 = vrot.slane %v748_v34, 4  ;;  %v2697_v34 = vld.sshfl [vmem:[#allocation1 + $0x18] sm:$0xff pattern:$0x75316420] }
 0x35f   :  { %v757_v32 = vmul.f32 %v2541_v22, %v756_v48  ;;  %1154 = vst [vmem:[#allocation1 + $0x10] ss:$2 sm:$0xff] %v2170_v26 }
 0x360   :  { %v768_v28 = vrot.slane %v751_v11, 4  ;;  %v836_v11 = vld [vmem:[#allocation4 + $0xf8] sm:$0xff] }
 0x361   :  { %v771_v29 = vrot.slane %v757_v32, 4  ;;  %v832_v32 = vld [vmem:[#allocation4 + $0xd8] sm:$0xff] }
 0x365   :  { %v741_v22 = vpop.permute.xlu0 %740 }
 0x366   :  { %v753_v58 = vpop.permute.xlu1 %752  ;;  %v742_v44 = vmul.f32 %v2577_v37, %v741_v22  ;;  %v808_v22 = vld [vmem:[#allocation4 + $0x18] sm:$0xff] }
 0x367   :  { %v754_v59 = vmul.f32 %v2546_v0, %v753_v58  ;;  %v775_v0 = vsel %vm384_vm3, %v2593_v31, %v768_v28  ;;  %v739_v31 = vmul.f32 %v738_v61, %v2585_v17  ;;  %v856_v17 = vld [vmem:[#allocation4 + $0x198] sm:$0xff]  ;;  %v809_v58 = vld [vmem:[#allocation4 + $0x20] sm:$0xff]  ;;  %v1157_v61 = vld.sshfl [vmem:[#allocation1 + $0x10] sm:$0xff pattern:$0x75316420] }
 0x368   :  { %v762_v37 = vrot.slane %v742_v44, 4  ;;  %883 = vmatpush.msra.mxu2 %v809_v58  ;;  %v805_v28 = vld [vmem:[#allocation4] sm:$0xff]  ;;  %v2704_v44 = vld.sshfl [vmem:[#allocation1] sm:$0xff pattern:$0x75316420] }
 0x369   :  { %v776_v8 = vsel %vm384_vm3, %v754_v59, %v771_v29  ;;  %v806_v29 = vld [vmem:[#allocation4 + $0x8] sm:$0xff]  ;;  %v807_v59 = vld [vmem:[#allocation4 + $0x10] sm:$0xff] }
 0x36a   :  { %796 = vmatpush.msra.mxu1 %v776_v8  ;;  %v773_v5 = vsel %vm384_vm3, %v739_v31, %v762_v37  ;;  %884 = vmatpush.msra.mxu2 %v805_v28 }
 0x36b   :  { %904 = vmatpush.msra.mxu3 %v806_v29  ;;  %924 = vmatpush.msrb.mxu0 %v807_v59  ;;  %v3237_v59 = vld [vmem:[#allocation14_spill] sm:$0xff] }
 0x36c   :  { %797 = vmatpush.msra.mxu1 %v775_v0  ;;  %v1129_v0 = vld.sshfl [vmem:[#allocation1 + $0x8] sm:$0xff pattern:$0x75316420] }
 0x36d   :  { %1152 = vst [vmem:[#allocation1] ss:$2 sm:$0xff] %v2314_v1 }
 0x36e   :  { %v744_v51 = vpop.permute.xlu1 %743 }
 0x36f   :  { %v745_v48 = vmul.f32 %v2571_v20, %v744_v51  ;;  %v864_v20 = vld [vmem:[#allocation4 + $0x1d8] sm:$0xff] }
 0x371   :  { %v774_v45 = vsel %vm384_vm3, %v745_v48, %v765_v54 }
 0x372   :  { %798 = vmatpush.msra.mxu1 %v774_v45 }
 0x374   :  { %799 = vmatpush.msra.mxu1 %v773_v5  ;;  %v1156_v48 = vld.sshfl [vmem:[#allocation1 + $0x8] sm:$0xff pattern:$0x75316420] }
 0x375   :  { %1845 = vmatmul.msk.f32.vlgmr.msra.gmra.mxu1 %vm405_vm10, %v1843_v18 }
 0x376   :  { %929 = vmatpush.msrb.mxu1 %v868_v60 }
 0x378   :  { %930 = vmatpush.msrb.mxu1 %v864_v20 }
 0x37a   :  { %931 = vmatpush.msrb.mxu1 %v860_v14 }
 0x37c   :  { %932 = vmatpush.msrb.mxu1 %v856_v17 }
 0x37e   :  { %933 = vmatpush.msrb.mxu1 %v852_v3 }
 0x380   :  { %934 = vmatpush.msrb.mxu1 %v848_v52 }
 0x382   :  { %935 = vmatpush.msrb.mxu1 %v844_v2  ;;  %v1155_v2 = vld.sshfl [vmem:[#allocation1] sm:$0xff pattern:$0x75316420] }
 0x383   :  { %1348 = vst [vmem:[#allocation1] ss:$2 sm:$0xff] %v2159_v23  ;;  %v3236_v23 = vld [vmem:[#allocation24_spill] sm:$0xff] }
 0x384   :  { %936 = vmatpush.msrb.mxu1 %v840_v36 }
 0x386   :  { %937 = vmatpush.msrb.mxu1 %v836_v11  ;;  %v1158_v11 = vld.sshfl [vmem:[#allocation1 + $0x18] sm:$0xff pattern:$0x75316420] }
 0x387   :  { %1350 = vst [vmem:[#allocation1 + $0x10] ss:$2 sm:$0xff] %v2064_v6 }
 0x388   :  { %938 = vmatpush.msrb.mxu1 %v832_v32  ;;  %v3235_v32 = vld [vmem:[#allocation26_spill] sm:$0xff] }
 0x38a   :  { %939 = vmatpush.msrb.mxu1 %v828_v35  ;;  %v2745_v41 = vld.sshfl [vmem:[#allocation1] sm:$0xff pattern:$0x75316420] }
 0x38c   :  { %940 = vmatpush.msrb.mxu1 %v824_v13 }
 0x38e   :  { %941 = vmatpush.msrb.mxu1 %v820_v21  ;;  %v2750_v28 = vld.sshfl [vmem:[#allocation1 + $0x10] sm:$0xff pattern:$0x75316420]  ;;  %v2752_v29 = vld.sshfl [vmem:[#allocation1 + $0x18] sm:$0xff pattern:$0x75316420] }
 0x390   :  { %942 = vmatpush.msrb.mxu1 %v816_v19 }
 0x392   :  { %943 = vmatpush.msrb.mxu1 %v812_v25  ;;  %v2747_v25 = vld.sshfl [vmem:[#allocation1 + $0x8] sm:$0xff pattern:$0x75316420] }
 0x393   :  { %1375 = vst [vmem:[#allocation1] ss:$2 sm:$0xff] %v3237_v59 }
 0x394   :  { %944 = vmatpush.msrb.mxu1 %v808_v22 }
 0x3f2   :  { %v801_v42 = vpop.f32.mrf.mxu1 }
 0x3f3   :  { %v804_v7 = vmax.f32 %v801_v42, 0.0  ;;  %v3238_v42 = vld [vmem:[#allocation8_spill] sm:$0xff] }
 0x3f4   :  { %1377 = vst [vmem:[#allocation1 + $0x10] ss:$2 sm:$0xff] %v3238_v42 }
 0x3f5   :  { %885 = vmatmul.f32.vlgmr.msra.gmra.mxu2 %v804_v7  ;;  %905 = vmatmul.f32.vlgmr.msra.gmra.mxu3 %v804_v7 }
 0x3f6   :  { %925 = vmatmul.f32.vlgmr.msrb.gmra.mxu0 %v804_v7  ;;  %945 = vmatmul.f32.vlgmr.msrb.gmra.mxu1 %v804_v7 }
 0x473   :  { %v2629_v43 = vpop.f32.mrf.mxu0  ;;  %v2637_v8 = vpop.f32.mrf.mxu1 }
 0x474   :  { %1063 = vrot.lane.b32.xlu2 %v2629_v43, %s1965_s0  ;;  %1144 = vrot.lane.b32.xlu0 %v2629_v43, %s1963_s14 }
 0x475   :  { %1117 = vrot.lane.b32.xlu1 %v2629_v43, %s1964_s15 }
 0x478   :  { %v2657_v15 = vpop.f32.mrf.mxu3  ;;  %v2665_v16 = vpop.f32.mrf.mxu2 }
 0x47c   :  { %1146 = vrot.lane.b32.xlu2 %v2637_v8, %s1963_s14  ;;  %1038 = vrot.lane.b32.xlu0 %v2637_v8, %s1962_s13 }
 0x47d   :  { %1090 = vrot.lane.b32.xlu1 %v2629_v43, %s1966_s16 }
 0x484   :  { %984 = vrot.lane.b32.xlu2 %v2637_v8, %s1967_s17  ;;  %1011 = vrot.lane.b32.xlu0 %v2637_v8, %s1968_s20 }
 0x485   :  { %1119 = vrot.lane.b32.xlu1 %v2637_v8, %s1964_s15 }
 0x48c   :  { %1092 = vrot.lane.b32.xlu2 %v2637_v8, %s1966_s16  ;;  %957 = vrot.lane.b32.xlu0 %v2637_v8, %s1969_s23 }
 0x48d   :  { %1065 = vrot.lane.b32.xlu1 %v2637_v8, %s1965_s0 }
 0x494   :  { %1142 = vrot.lane.b32.xlu2 %v2657_v15, %s1963_s14  ;;  %1115 = vrot.lane.b32.xlu0 %v2657_v15, %s1964_s15 }
 0x495   :  { %1036 = vrot.lane.b32.xlu1 %v2629_v43, %s1962_s13 }
 0x49c   :  { %1088 = vrot.lane.b32.xlu0 %v2657_v15, %s1966_s16  ;;  %1113 = vrot.lane.b32.xlu2 %v2665_v16, %s1964_s15 }
 0x49d   :  { %1061 = vrot.lane.b32.xlu1 %v2657_v15, %s1965_s0 }
 0x4a4   :  { %1140 = vrot.lane.b32.xlu0 %v2665_v16, %s1963_s14  ;;  %1034 = vrot.lane.b32.xlu2 %v2657_v15, %s1962_s13 }
 0x4a5   :  { %1032 = vrot.lane.b32.xlu1 %v2665_v16, %s1962_s13 }
 0x4ac   :  { %1059 = vrot.lane.b32.xlu0 %v2665_v16, %s1965_s0  ;;  %978 = vrot.lane.b32.xlu2 %v2665_v16, %s1967_s17 }
 0x4ad   :  { %1086 = vrot.lane.b32.xlu1 %v2665_v16, %s1966_s16 }
 0x4b4   :  { %980 = vrot.lane.b32.xlu0 %v2657_v15, %s1967_s17  ;;  %1007 = vrot.lane.b32.xlu2 %v2657_v15, %s1968_s20 }
 0x4b5   :  { %1005 = vrot.lane.b32.xlu1 %v2665_v16, %s1968_s20 }
 0x4bc   :  { %951 = vrot.lane.b32.xlu0 %v2665_v16, %s1969_s23  ;;  %982 = vrot.lane.b32.xlu2 %v2629_v43, %s1967_s17 }
 0x4bd   :  { %953 = vrot.lane.b32.xlu1 %v2657_v15, %s1969_s23 }
 0x4c4   :  { %1009 = vrot.lane.b32.xlu0 %v2629_v43, %s1968_s20 }
 0x4c5   :  { %955 = vrot.lane.b32.xlu1 %v2629_v43, %s1969_s23 }
 0x4ce   :  { %v1064_v38 = vpop.permute.xlu2 %1063 }
 0x4d6   :  { %v2707_v50 = vpop.permute.xlu2 %1146 }
 0x4de   :  { %v2709_v39 = vpop.permute.xlu2 %984 }
 0x4e6   :  { %v2711_v51 = vpop.permute.xlu2 %1092  ;;  %v1145_v49 = vpop.permute.xlu0 %1144 }
 0x4e7   :  { %v1148_v53 = vsel %vm311_vm0, %v1145_v49, %v2707_v50  ;;  %v1118_v4 = vpop.permute.xlu1 %1117 }
 0x4e8   :  { %v1165_v54 = vmul.f32 %v1157_v61, %v1148_v53 }
 0x4ea   :  { %v1233_v37 = vsel %vm384_vm3, %v1165_v54, 1.0  ;;  %v2762_v54 = vld.sshfl [vmem:[#allocation1] sm:$0xff pattern:$0x75316420] }
 0x4eb   :  { %1851 = vmatpush.msk.msra.mxu0 %vm409_vm4, %v1233_v37  ;;  %v2764_v37 = vld.sshfl [vmem:[#allocation1 + $0x8] sm:$0xff pattern:$0x75316420] }
 0x4ee   :  { %v2718_v31 = vpop.permute.xlu0 %1038  ;;  %v2720_v45 = vpop.permute.xlu2 %1142 }
 0x4ef   :  { %v1091_v18 = vpop.permute.xlu1 %1090  ;;  %v1149_v5 = vsel %vm311_vm0, %v2720_v45, %v1145_v49 }
 0x4f0   :  { %v1164_v60 = vmul.f32 %v1156_v48, %v1149_v5  ;;  %v1094_v3 = vsel %vm245_vm5, %v1091_v18, %v2711_v51  ;;  %v2766_v48 = vld.sshfl [vmem:[#allocation1 + $0x10] sm:$0xff pattern:$0x75316420]  ;;  %v2768_v5 = vld.sshfl [vmem:[#allocation1 + $0x18] sm:$0xff pattern:$0x75316420] }
 0x4f1   :  { %v1111_v35 = vmul.f32 %v3235_v32, %v1094_v3 }
 0x4f2   :  { %v1232_v20 = vsel %vm384_vm3, %v1164_v60, 1.0 }
 0x4f3   :  { %1849 = vmatpush.msk.msrb.mxu3 %vm409_vm4, %v1232_v20  ;;  %v3239_v20 = vld [vmem:[#allocation15_spill] sm:$0xff] }
 0x4f4   :  { %1402 = vst [vmem:[#allocation1] ss:$2 sm:$0xff] %v3239_v20 }
 0x4f6   :  { %v2727_v14 = vpop.permute.xlu0 %1011  ;;  %v1114_v49 = vpop.permute.xlu2 %1113 }
 0x4f7   :  { %v1120_v17 = vpop.permute.xlu1 %1119 }
 0x4f8   :  { %v1121_v52 = vsel %vm278_vm2, %v1118_v4, %v1120_v17 }
 0x4f9   :  { %v1138_v36 = vmul.f32 %v1130_v10, %v1121_v52 }
 0x4fb   :  { %v1209_v13 = vrot.slane %v1138_v36, 4 }
 0x4fd   :  { %v1229_v21 = vsel %vm384_vm3, %v1111_v35, %v1209_v13 }
 0x4fe   :  { %1302 = vmatpush.msra.mxu0 %v1229_v21  ;;  %v2738_v19 = vpop.permute.xlu0 %957  ;;  %v2778_v21 = vpop.permute.xlu2 %1034 }
 0x4ff   :  { %v2740_v58 = vpop.permute.xlu1 %1065 }
 0x500   :  { %v1067_v12 = vsel %vm212_vm1, %v1064_v38, %v2740_v58 }
 0x501   :  { %v1084_v6 = vmul.f32 %v3236_v23, %v1067_v12  ;;  %v2781_v23 = vld.sshfl [vmem:[#allocation1] sm:$0xff pattern:$0x75316420] }
 0x503   :  { %v1197_v22 = vrot.slane %v1084_v6, 4  ;;  %v2783_v6 = vld.sshfl [vmem:[#allocation1 + $0x8] sm:$0xff pattern:$0x75316420] }
 0x504   :  { %1429 = vst [vmem:[#allocation1] ss:$2 sm:$0xff] %v2207_v40 }
 0x505   :  { %v1225_v7 = vsel %vm384_vm3, %v2629_v43, %v1197_v22  ;;  %v3240_v43 = vld [vmem:[#allocation9_spill] sm:$0xff] }
 0x506   :  { %1303 = vmatpush.msra.mxu0 %v1225_v7  ;;  %v1116_v10 = vpop.permute.xlu0 %1115  ;;  %1404 = vst [vmem:[#allocation1 + $0x10] ss:$2 sm:$0xff] %v3240_v43 }
 0x507   :  { %v2758_v61 = vpop.permute.xlu1 %1036  ;;  %v1122_v53 = vsel %vm278_vm2, %v1116_v10, %v1118_v4  ;;  %v1123_v40 = vsel %vm278_vm2, %v1114_v49, %v1116_v10 }
 0x508   :  { %v1137_v60 = vmul.f32 %v1129_v0, %v1122_v53 }
 0x50a   :  { %v1208_v32 = vrot.slane %v1137_v60, 4 }
 0x50d   :  { %v2785_v59 = vld.sshfl [vmem:[#allocation1 + $0x10] sm:$0xff pattern:$0x75316420] }
 0x50e   :  { %v1089_v3 = vpop.permute.xlu0 %1088 }
 0x50f   :  { %v1062_v52 = vpop.permute.xlu1 %1061  ;;  %v1095_v36 = vsel %vm245_vm5, %v1089_v3, %v1091_v18 }
 0x510   :  { %v1068_v4 = vsel %vm212_vm1, %v1062_v52, %v1064_v38  ;;  %v1110_v35 = vmul.f32 %v2523_v27, %v1095_v36  ;;  %v2789_v38 = vld.sshfl [vmem:[#allocation1 + $0x18] sm:$0xff pattern:$0x75316420]  ;;  %v2807_v36 = vld.sshfl [vmem:[#allocation1] sm:$0xff pattern:$0x75316420] }
 0x511   :  { %v1083_v13 = vmul.f32 %v2498_v63, %v1068_v4  ;;  %v3241_v63 = vld [vmem:[#allocation10_spill] sm:$0xff] }
 0x512   :  { %v1228_v0 = vsel %vm384_vm3, %v1110_v35, %v1208_v32  ;;  %1431 = vst [vmem:[#allocation1 + $0x10] ss:$2 sm:$0xff] %v3241_v63  ;;  %v3242_v32 = vld [vmem:[#allocation11_spill] sm:$0xff] }
 0x513   :  { %v1196_v12 = vrot.slane %v1083_v13, 4  ;;  %1282 = vmatpush.msrb.mxu3 %v1228_v0  ;;  %v3243_v0 = vld [vmem:[#allocation25_spill] sm:$0xff] }
 0x515   :  { %v1224_v18 = vsel %vm384_vm3, %v2657_v15, %v1196_v12  ;;  %v1124_v15 = vsel %vm278_vm2, %v1120_v17, %v1114_v49  ;;  %v1136_v17 = vmul.f32 %v2704_v44, %v1123_v40 }
 0x516   :  { %1283 = vmatpush.msrb.mxu3 %v1224_v18  ;;  %v1141_v27 = vpop.permute.xlu0 %1140 }
 0x517   :  { %v1033_v22 = vpop.permute.xlu1 %1032  ;;  %v1150_v42 = vsel %vm311_vm0, %v1141_v27, %v2720_v45  ;;  %v1151_v7 = vsel %vm311_vm0, %v2707_v50, %v1141_v27  ;;  %v979_v45 = vpop.permute.xlu2 %978  ;;  %v2809_v50 = vld.sshfl [vmem:[#allocation1 + $0x8] sm:$0xff pattern:$0x75316420]  ;;  %v1207_v63 = vrot.slane %v1136_v17, 4 }
 0x518   :  { %v1163_v53 = vmul.f32 %v1155_v2, %v1150_v42  ;;  %v1166_v60 = vmul.f32 %v1158_v11, %v1151_v7  ;;  %v1139_v2 = vmul.f32 %v2697_v34, %v1124_v15  ;;  %1456 = vst [vmem:[#allocation1] ss:$2 sm:$0xff] %v2226_v47  ;;  %v3245_v17 = vld [vmem:[#allocation12_spill] sm:$0xff] }
 0x519   :  { %v2813_v11 = vld.sshfl [vmem:[#allocation1 + $0x10] sm:$0xff pattern:$0x75316420]  ;;  %v2815_v10 = vld.sshfl [vmem:[#allocation1 + $0x18] sm:$0xff pattern:$0x75316420] }
 0x51a   :  { %v1231_v20 = vsel %vm384_vm3, %v1163_v53, 1.0  ;;  %v1234_v43 = vsel %vm384_vm3, %v1166_v60, 1.0  ;;  %1458 = vst [vmem:[#allocation1 + $0x10] ss:$2 sm:$0xff] %v3242_v32  ;;  %v1210_v18 = vrot.slane %v1139_v2, 4 }
 0x51b   :  { %1847 = vmatpush.msk.msrb.mxu2 %vm409_vm4, %v1231_v20  ;;  %1853 = vmatpush.msk.msra.mxu1 %vm409_vm4, %v1234_v43 }
 0x51e   :  { %v1060_v49 = vpop.permute.xlu0 %1059 }
 0x51f   :  { %v1087_v4 = vpop.permute.xlu1 %1086  ;;  %v1069_v35 = vsel %vm212_vm1, %v1060_v49, %v1062_v52  ;;  %v1070_v13 = vsel %vm212_vm1, %v2740_v58, %v1060_v49  ;;  %v3244_v52 = vld [vmem:[#allocation27_spill] sm:$0xff]  ;;  %v1042_v58 = vsel %vm179_vm6, %v1033_v22, %v2778_v21  ;;  %v1008_v20 = vpop.permute.xlu2 %1007 }
 0x520   :  { %v1096_v34 = vsel %vm245_vm5, %v1087_v4, %v1089_v3  ;;  %v1097_v44 = vsel %vm245_vm5, %v2711_v51, %v1087_v4  ;;  %v1082_v47 = vmul.f32 %v2496_v62, %v1069_v35  ;;  %v1085_v12 = vmul.f32 %v3243_v0, %v1070_v13 }
 0x521   :  { %v1109_v27 = vmul.f32 %v2521_v9, %v1096_v34  ;;  %v1112_v42 = vmul.f32 %v3244_v52, %v1097_v44  ;;  %v1043_v3 = vsel %vm179_vm6, %v2718_v31, %v1033_v22  ;;  %v1056_v40 = vmul.f32 %v2463_v30, %v1042_v58  ;;  %v2847_v22 = vld.sshfl [vmem:[#allocation1 + $0x10] sm:$0xff pattern:$0x75316420]  ;;  %v2849_v43 = vld.sshfl [vmem:[#allocation1 + $0x18] sm:$0xff pattern:$0x75316420] }
 0x522   :  { %v1195_v7 = vrot.slane %v1082_v47, 4  ;;  %v1198_v51 = vrot.slane %v1085_v12, 4  ;;  %v1055_v15 = vmul.f32 %v2461_v24, %v1043_v3  ;;  %1485 = vst [vmem:[#allocation1 + $0x10] ss:$2 sm:$0xff] %v3245_v17  ;;  %v3246_v47 = vld [vmem:[#allocation30_spill] sm:$0xff]  ;;  %v3247_v12 = vld [vmem:[#allocation31_spill] sm:$0xff]  ;;  %v1040_v58 = vsel %vm179_vm6, %v2758_v61, %v2718_v31 }
 0x523   :  { %v1227_v62 = vsel %vm384_vm3, %v1109_v27, %v1207_v63  ;;  %v1230_v53 = vsel %vm384_vm3, %v1112_v42, %v1210_v18  ;;  %v1184_v32 = vrot.slane %v1056_v40, 4 }
 0x524   :  { %1262 = vmatpush.msrb.mxu2 %v1227_v62  ;;  %1322 = vmatpush.msra.mxu1 %v1230_v53  ;;  %v1223_v9 = vsel %vm384_vm3, %v2665_v16, %v1195_v7  ;;  %v1226_v60 = vsel %vm384_vm3, %v2637_v8, %v1198_v51  ;;  %v989_v16 = vsel %vm113_vm8, %v2709_v39, %v979_v45  ;;  %v1183_v8 = vrot.slane %v1055_v15, 4  ;;  %v3249_v62 = vld [vmem:[#allocation28_spill] sm:$0xff]  ;;  %v3251_v15 = vld [vmem:[#allocation22_spill] sm:$0xff] }
 0x525   :  { %v1001_v0 = vmul.f32 %v3246_v47, %v989_v16 }
 0x526   :  { %1263 = vmatpush.msrb.mxu2 %v1223_v9  ;;  %1323 = vmatpush.msra.mxu1 %v1226_v60  ;;  %v981_v2 = vpop.permute.xlu0 %980  ;;  %v3250_v9 = vld [vmem:[#allocation29_spill] sm:$0xff] }
 0x527   :  { %v1006_v49 = vpop.permute.xlu1 %1005  ;;  %v988_v13 = vsel %vm113_vm8, %v979_v45, %v981_v2  ;;  %v3248_v45 = vld [vmem:[#allocation13_spill] sm:$0xff]  ;;  %v1171_v3 = vrot.slane %v1001_v0, 4  ;;  %v983_v7 = vpop.permute.xlu2 %982 }
 0x528   :  { %v1015_v24 = vsel %vm146_vm7, %v1006_v49, %v1008_v20  ;;  %v1016_v30 = vsel %vm146_vm7, %v2727_v14, %v1006_v49  ;;  %v1002_v18 = vmul.f32 %v3247_v12, %v988_v13  ;;  %v3252_v49 = vld [vmem:[#allocation23_spill] sm:$0xff]  ;;  %v986_v31 = vsel %vm113_vm8, %v983_v7, %v2709_v39 }
 0x529   :  { %v1028_v4 = vmul.f32 %v2432_v46, %v1016_v30  ;;  %v1029_v35 = vmul.f32 %v2434_v56, %v1015_v24  ;;  %v2868_v63 = vld.sshfl [vmem:[#allocation1 + $0x10] sm:$0xff pattern:$0x75316420]  ;;  %v2870_v27 = vld.sshfl [vmem:[#allocation1 + $0x18] sm:$0xff pattern:$0x75316420]  ;;  %v1041_v56 = vsel %vm179_vm6, %v2778_v21, %v2758_v61  ;;  %v1058_v16 = vmul.f32 %v3252_v49, %v1040_v58 }
 0x52a   :  { %1512 = vst [vmem:[#allocation1 + $0x10] ss:$2 sm:$0xff] %v3248_v45  ;;  %v1172_v21 = vrot.slane %v1002_v18, 4  ;;  %v1057_v40 = vmul.f32 %v3251_v15, %v1041_v56  ;;  %v987_v61 = vsel %vm113_vm8, %v981_v2, %v983_v7  ;;  %v1846_v30 = vld [vmem:[%s3197_s1 + $0xc] sm:$0xf]  ;;  %v3256_v56 = vld [vmem:[#allocation21_spill] sm:$0xff] }
 0x52b   :  { %v1219_v34 = vsel %vm384_vm3, %v1028_v4, %v1183_v8  ;;  %v1220_v44 = vsel %vm384_vm3, %v1029_v35, %v1184_v32  ;;  %v3253_v8 = vld [vmem:[#allocation19_spill] sm:$0xff]  ;;  %v3254_v4 = vld [vmem:[#allocation18_spill] sm:$0xff]  ;;  %v3255_v18 = vld [vmem:[#allocation20_spill] sm:$0xff] }
 0x52c   :  { %1264 = vmatpush.msrb.mxu2 %v1219_v34  ;;  %1284 = vmatpush.msrb.mxu3 %v1220_v44  ;;  %v1004_v32 = vmul.f32 %v3253_v8, %v986_v31  ;;  %v1003_v35 = vmul.f32 %v3254_v4, %v987_v61  ;;  %v1185_v13 = vrot.slane %v1057_v40, 4  ;;  %v1186_v34 = vrot.slane %v1058_v16, 4  ;;  %v2992_v16 = vld.sshfl [vmem:[#allocation1] sm:$0xff pattern:$0x75316420] }
 0x52d   :  { %v2994_v31 = vld.sshfl [vmem:[#allocation1 + $0x8] sm:$0xff pattern:$0x75316420] }
 0x52e   :  { %v952_v46 = vpop.permute.xlu0 %951  ;;  %1483 = vst [vmem:[#allocation1] ss:$2 sm:$0xff] %v2250_v57 }
 0x52f   :  { %v954_v52 = vpop.permute.xlu1 %953  ;;  %v962_v42 = vsel %vm81_vm9, %v2738_v19, %v952_v46 }
 0x530   :  { %v961_v51 = vsel %vm81_vm9, %v952_v46, %v954_v52  ;;  %v974_v53 = vmul.f32 %v3249_v62, %v962_v42  ;;  %v3257_v42 = vld [vmem:[#allocation16_spill] sm:$0xff] }
 0x531   :  { %v975_v60 = vmul.f32 %v3250_v9, %v961_v51  ;;  %v1174_v51 = vrot.slane %v1004_v32, 4  ;;  %v1515_v61 = vld.sshfl [vmem:[#allocation1 + $0x10] sm:$0xff pattern:$0x75316420] }
 0x532   :  { %v1215_v17 = vsel %vm384_vm3, %v974_v53, %v1171_v3  ;;  %v3258_v3 = vld [vmem:[#allocation17_spill] sm:$0xff] }
 0x533   :  { %1265 = vmatpush.msrb.mxu2 %v1215_v17  ;;  %v1216_v24 = vsel %vm384_vm3, %v975_v60, %v1172_v21 }
 0x534   :  { %1285 = vmatpush.msrb.mxu3 %v1216_v24  ;;  %1848 = vmatmul.msk.f32.vlgmr.msrb.gmra.mxu2 %vm405_vm10, %v1846_v30  ;;  %v3001_v24 = vld.sshfl [vmem:[#allocation1 + $0x18] sm:$0xff pattern:$0x75316420] }
 0x535   :  { %1850 = vmatmul.msk.f32.vlgmr.msrb.gmra.mxu3 %vm405_vm10, %v1846_v30  ;;  %1539 = vst [vmem:[#allocation1 + $0x10] ss:$2 sm:$0xff] %v2170_v26  ;;  %v1487_v8 = vld.sshfl [vmem:[#allocation1 + $0x8] sm:$0xff pattern:$0x75316420] }
 0x536   :  { %v1010_v39 = vpop.permute.xlu0 %1009 }
 0x537   :  { %v956_v2 = vpop.permute.xlu1 %955  ;;  %v1013_v44 = vsel %vm146_vm7, %v1010_v39, %v2727_v14  ;;  %v1014_v47 = vsel %vm146_vm7, %v1008_v20, %v1010_v39  ;;  %v1173_v14 = vrot.slane %v1003_v35, 4 }
 0x538   :  { %v959_v0 = vsel %vm81_vm9, %v956_v2, %v2738_v19  ;;  %v960_v12 = vsel %vm81_vm9, %v954_v52, %v956_v2  ;;  %v1030_v46 = vmul.f32 %v3255_v18, %v1014_v47  ;;  %v1031_v45 = vmul.f32 %v3256_v56, %v1013_v44 }
 0x539   :  { %v976_v58 = vmul.f32 %v3257_v42, %v960_v12  ;;  %v977_v7 = vmul.f32 %v3258_v3, %v959_v0 }
 0x53a   :  { %v1221_v62 = vsel %vm384_vm3, %v1030_v46, %v1185_v13  ;;  %v1222_v20 = vsel %vm384_vm3, %v1031_v45, %v1186_v34 }
 0x53b   :  { %1304 = vmatpush.msra.mxu0 %v1221_v62  ;;  %1324 = vmatpush.msra.mxu1 %v1222_v20  ;;  %v1217_v19 = vsel %vm384_vm3, %v976_v58, %v1173_v14  ;;  %v1218_v52 = vsel %vm384_vm3, %v977_v7, %v1174_v51 }
 0x53c   :  { %v1542_v26 = vld.sshfl [vmem:[#allocation1 + $0x10] sm:$0xff pattern:$0x75316420]  ;;  %v1543_v45 = vld.sshfl [vmem:[#allocation1 + $0x18] sm:$0xff pattern:$0x75316420] }
 0x53d   :  { %1305 = vmatpush.msra.mxu0 %v1217_v19  ;;  %1325 = vmatpush.msra.mxu1 %v1218_v52 }
 0x53e   :  { %1852 = vmatmul.msk.f32.vlgmr.msra.gmra.mxu0 %vm405_vm10, %v1846_v30  ;;  %1854 = vmatmul.msk.f32.vlgmr.msra.gmra.mxu1 %vm405_vm10, %v1846_v30  ;;  %v3004_v30 = vld.sshfl [vmem:[#allocation1] sm:$0xff pattern:$0x75316420] }
 0x53f   :  { %1510 = vst [vmem:[#allocation1] ss:$2 sm:$0xff] %v2287_v33 }
 0x546   :  { %v1514_v35 = vld.sshfl [vmem:[#allocation1 + $0x8] sm:$0xff pattern:$0x75316420]  ;;  %v3011_v39 = vld.sshfl [vmem:[#allocation1] sm:$0xff pattern:$0x75316420] }
 0x547   :  { %1537 = vst [vmem:[#allocation1] ss:$2 sm:$0xff] %v2314_v1 }
 0x5b7   :  { %v1267_v17 = vpop.f32.mrf.mxu2 }
 0x5b8   :  { %v1287_v15 = vpop.f32.mrf.mxu3  ;;  %v2960_v49 = vmax.f32 %v1267_v17, 0.0 }
 0x5b9   :  { %v2952_v40 = vmax.f32 %v1287_v15, 0.0 }
 0x5bb   :  { %v1307_v53 = vpop.f32.mrf.mxu0  ;;  %v1327_v9 = vpop.f32.mrf.mxu1 }
 0x5bc   :  { %v2924_v21 = vmax.f32 %v1307_v53, 0.0  ;;  %v2932_v60 = vmax.f32 %v1327_v9, 0.0 }
 0x5be   :  { %1448 = vrot.lane.b32.xlu1 %v2924_v21, %s1965_s0  ;;  %1529 = vrot.lane.b32.xlu2 %v2924_v21, %s1963_s14 }
 0x5bf   :  { %1502 = vrot.lane.b32.xlu0 %v2924_v21, %s1964_s15 }
 0x5c6   :  { %1531 = vrot.lane.b32.xlu1 %v2932_v60, %s1963_s14  ;;  %1423 = vrot.lane.b32.xlu2 %v2932_v60, %s1962_s13 }
 0x5c7   :  { %1475 = vrot.lane.b32.xlu0 %v2924_v21, %s1966_s16 }
 0x5ce   :  { %1369 = vrot.lane.b32.xlu1 %v2932_v60, %s1967_s17  ;;  %1396 = vrot.lane.b32.xlu2 %v2932_v60, %s1968_s20 }
 0x5cf   :  { %1421 = vrot.lane.b32.xlu0 %v2924_v21, %s1962_s13 }
 0x5d6   :  { %1477 = vrot.lane.b32.xlu1 %v2932_v60, %s1966_s16  ;;  %1342 = vrot.lane.b32.xlu2 %v2932_v60, %s1969_s23 }
 0x5d7   :  { %1504 = vrot.lane.b32.xlu0 %v2932_v60, %s1964_s15 }
 0x5de   :  { %1527 = vrot.lane.b32.xlu1 %v2952_v40, %s1963_s14  ;;  %1500 = vrot.lane.b32.xlu2 %v2952_v40, %s1964_s15 }
 0x5df   :  { %1450 = vrot.lane.b32.xlu0 %v2932_v60, %s1965_s0 }
 0x5e6   :  { %1498 = vrot.lane.b32.xlu1 %v2960_v49, %s1964_s15  ;;  %1473 = vrot.lane.b32.xlu2 %v2952_v40, %s1966_s16 }
 0x5e7   :  { %1446 = vrot.lane.b32.xlu0 %v2952_v40, %s1965_s0 }
 0x5ee   :  { %1419 = vrot.lane.b32.xlu1 %v2952_v40, %s1962_s13  ;;  %1525 = vrot.lane.b32.xlu2 %v2960_v49, %s1963_s14 }
 0x5ef   :  { %1417 = vrot.lane.b32.xlu0 %v2960_v49, %s1962_s13 }
 0x5f6   :  { %1363 = vrot.lane.b32.xlu1 %v2960_v49, %s1967_s17  ;;  %1444 = vrot.lane.b32.xlu2 %v2960_v49, %s1965_s0 }
 0x5f7   :  { %1471 = vrot.lane.b32.xlu0 %v2960_v49, %s1966_s16 }
 0x5fe   :  { %1392 = vrot.lane.b32.xlu1 %v2952_v40, %s1968_s20  ;;  %1365 = vrot.lane.b32.xlu2 %v2952_v40, %s1967_s17 }
 0x5ff   :  { %1390 = vrot.lane.b32.xlu0 %v2960_v49, %s1968_s20 }
 0x606   :  { %1367 = vrot.lane.b32.xlu1 %v2924_v21, %s1967_s17  ;;  %1336 = vrot.lane.b32.xlu2 %v2960_v49, %s1969_s23 }
 0x607   :  { %1338 = vrot.lane.b32.xlu0 %v2952_v40, %s1969_s23 }
 0x60e   :  { %1394 = vrot.lane.b32.xlu2 %v2924_v21, %s1968_s20 }
 0x60f   :  { %1340 = vrot.lane.b32.xlu0 %v2924_v21, %s1969_s23 }
 0x618   :  { %v1530_v32 = vpop.permute.xlu2 %1529 }
 0x620   :  { %v3007_v4 = vpop.permute.xlu2 %1423 }
 0x628   :  { %v3009_v57 = vpop.permute.xlu2 %1396 }
 0x630   :  { %v1449_v13 = vpop.permute.xlu1 %1448  ;;  %v3014_v34 = vpop.permute.xlu2 %1342 }
 0x631   :  { %v1503_v2 = vpop.permute.xlu0 %1502 }
 0x638   :  { %v1532_v44 = vpop.permute.xlu1 %1531  ;;  %v1501_v47 = vpop.permute.xlu2 %1500 }
 0x639   :  { %v1476_v0 = vpop.permute.xlu0 %1475  ;;  %v1533_v33 = vsel %vm311_vm0, %v1530_v32, %v1532_v44  ;;  %v1507_v52 = vsel %vm278_vm2, %v1501_v47, %v1503_v2 }
 0x63a   :  { %v1550_v12 = vmul.f32 %v1542_v26, %v1533_v33  ;;  %v1540_v26 = vld.sshfl [vmem:[#allocation1] sm:$0xff pattern:$0x75316420]  ;;  %v1522_v33 = vmul.f32 %v1514_v35, %v1507_v52 }
 0x63c   :  { %v1618_v18 = vsel %vm384_vm3, %v1550_v12, 1.0 }
 0x63d   :  { %1860 = vmatpush.msk.msrb.mxu0 %vm409_vm4, %v1618_v18 }
 0x640   :  { %v3020_v46 = vpop.permute.xlu1 %1369  ;;  %v3022_v56 = vpop.permute.xlu2 %1473 }
 0x641   :  { %v3024_v1 = vpop.permute.xlu0 %1421  ;;  %v1480_v15 = vsel %vm245_vm5, %v3022_v56, %v1476_v0 }
 0x648   :  { %v3026_v42 = vpop.permute.xlu1 %1477  ;;  %v1526_v58 = vpop.permute.xlu2 %1525 }
 0x649   :  { %v1505_v3 = vpop.permute.xlu0 %1504  ;;  %v1536_v7 = vsel %vm311_vm0, %v1532_v44, %v1526_v58  ;;  %v1479_v51 = vsel %vm245_vm5, %v1476_v0, %v3026_v42  ;;  %v1541_v44 = vld.sshfl [vmem:[#allocation1 + $0x8] sm:$0xff pattern:$0x75316420] }
 0x64a   :  { %v1506_v14 = vsel %vm278_vm2, %v1503_v2, %v1505_v3  ;;  %v1551_v62 = vmul.f32 %v1543_v45, %v1536_v7  ;;  %v1496_v53 = vmul.f32 %v2868_v63, %v1479_v51  ;;  %v1495_v45 = vmul.f32 %v1487_v8, %v1480_v15 }
 0x64b   :  { %v1523_v20 = vmul.f32 %v1515_v61, %v1506_v14 }
 0x64c   :  { %v1619_v19 = vsel %vm384_vm3, %v1551_v62, 1.0  ;;  %v1593_v62 = vrot.slane %v1522_v33, 4 }
 0x64d   :  { %v1594_v9 = vrot.slane %v1523_v20, 4  ;;  %1862 = vmatpush.msk.msrb.mxu1 %vm409_vm4, %v1619_v19 }
 0x64f   :  { %v1614_v17 = vsel %vm384_vm3, %v1496_v53, %v1594_v9 }
 0x650   :  { %1687 = vmatpush.msrb.mxu0 %v1614_v17  ;;  %v1528_v61 = vpop.permute.xlu1 %1527  ;;  %v1445_v12 = vpop.permute.xlu2 %1444 }
 0x651   :  { %v1534_v2 = vsel %vm311_vm0, %v1528_v61, %v1530_v32  ;;  %v1535_v63 = vsel %vm311_vm0, %v1526_v58, %v1528_v61  ;;  %v1451_v18 = vpop.permute.xlu0 %1450  ;;  %v1613_v32 = vsel %vm384_vm3, %v1495_v45, %v1593_v62 }
 0x652   :  { %v1548_v7 = vmul.f32 %v1540_v26, %v1535_v63  ;;  %v1549_v51 = vmul.f32 %v1541_v44, %v1534_v2  ;;  %v1452_v0 = vsel %vm212_vm1, %v1449_v13, %v1451_v18 }
 0x653   :  { %v1469_v14 = vmul.f32 %v2847_v22, %v1452_v0 }
 0x654   :  { %v1616_v35 = vsel %vm384_vm3, %v1548_v7, 1.0  ;;  %v1617_v20 = vsel %vm384_vm3, %v1549_v51, 1.0 }
 0x655   :  { %v1582_v19 = vrot.slane %v1469_v14, 4  ;;  %1856 = vmatpush.msk.msra.mxu2 %vm409_vm4, %v1616_v35  ;;  %1858 = vmatpush.msk.msra.mxu3 %vm409_vm4, %v1617_v20 }
 0x657   :  { %1667 = vmatpush.msra.mxu3 %v1613_v32  ;;  %v1610_v8 = vsel %vm384_vm3, %v2924_v21, %v1582_v19  ;;  %v1455_v21 = vsel %vm212_vm1, %v1451_v18, %v1445_v12  ;;  %v1425_v18 = vsel %vm179_vm6, %v3024_v1, %v3007_v4 }
 0x658   :  { %1688 = vmatpush.msrb.mxu0 %v1610_v8  ;;  %v1499_v58 = vpop.permute.xlu1 %1498  ;;  %v3058_v52 = vpop.permute.xlu2 %1365  ;;  %v1470_v2 = vmul.f32 %v2849_v43, %v1455_v21 }
 0x659   :  { %v1447_v22 = vpop.permute.xlu0 %1446  ;;  %v1508_v61 = vsel %vm278_vm2, %v1499_v58, %v1501_v47 }
 0x65a   :  { %v1453_v53 = vsel %vm212_vm1, %v1447_v22, %v1449_v13  ;;  %v1509_v13 = vsel %vm278_vm2, %v1505_v3, %v1499_v58  ;;  %v1443_v3 = vmul.f32 %v2815_v10, %v1425_v18  ;;  %v1583_v51 = vrot.slane %v1470_v2, 4 }
 0x65b   :  { %v1468_v9 = vmul.f32 %v2994_v31, %v1453_v53  ;;  %v1454_v31 = vsel %vm212_vm1, %v1445_v12, %v1447_v22  ;;  %v1524_v63 = vmul.f32 %v3001_v24, %v1509_v13 }
 0x65c   :  { %v1467_v45 = vmul.f32 %v2992_v16, %v1454_v31 }
 0x65d   :  { %v1581_v15 = vrot.slane %v1468_v9, 4  ;;  %v1595_v12 = vrot.slane %v1524_v63, 4 }
 0x65f   :  { %v1609_v17 = vsel %vm384_vm3, %v2952_v40, %v1581_v15  ;;  %v1521_v40 = vmul.f32 %v3011_v39, %v1508_v61  ;;  %v1580_v39 = vrot.slane %v1467_v45, 4 }
 0x660   :  { %1668 = vmatpush.msra.mxu3 %v1609_v17  ;;  %v1420_v26 = vpop.permute.xlu1 %1419  ;;  %v3065_v44 = vpop.permute.xlu2 %1336 }
 0x661   :  { %v1418_v33 = vpop.permute.xlu0 %1417  ;;  %v1592_v0 = vrot.slane %v1521_v40, 4  ;;  %v1426_v43 = vsel %vm179_vm6, %v1420_v26, %v3024_v1  ;;  %v1608_v22 = vsel %vm384_vm3, %v2960_v49, %v1580_v39 }
 0x662   :  { %v1428_v62 = vsel %vm179_vm6, %v3007_v4, %v1418_v33  ;;  %v1442_v20 = vmul.f32 %v2813_v11, %v1426_v43  ;;  %v1571_v4 = vrot.slane %v1443_v3, 4  ;;  %v1611_v11 = vsel %vm384_vm3, %v2932_v60, %v1583_v51 }
 0x664   :  { %v1570_v53 = vrot.slane %v1442_v20, 4 }
 0x668   :  { %v1364_v47 = vpop.permute.xlu1 %1363  ;;  %v1395_v7 = vpop.permute.xlu2 %1394 }
 0x669   :  { %v1472_v14 = vpop.permute.xlu0 %1471  ;;  %v1398_v10 = vsel %vm146_vm7, %v1395_v7, %v3009_v57  ;;  %v1373_v13 = vsel %vm113_vm8, %v1364_v47, %v3058_v52 }
 0x66a   :  { %v1481_v24 = vsel %vm245_vm5, %v1472_v14, %v3022_v56  ;;  %v1482_v16 = vsel %vm245_vm5, %v3026_v42, %v1472_v14  ;;  %v1427_v56 = vsel %vm179_vm6, %v1418_v33, %v1420_v26  ;;  %v1374_v42 = vsel %vm113_vm8, %v3020_v46, %v1364_v47 }
 0x66b   :  { %v1494_v35 = vmul.f32 %v3004_v30, %v1481_v24  ;;  %v1497_v1 = vmul.f32 %v2870_v27, %v1482_v16  ;;  %v1416_v19 = vmul.f32 %v2789_v38, %v1398_v10  ;;  %v1440_v30 = vmul.f32 %v2807_v36, %v1428_v62 }
 0x66c   :  { %v1441_v27 = vmul.f32 %v2809_v50, %v1427_v56  ;;  %v1386_v58 = vmul.f32 %v2762_v54, %v1374_v42  ;;  %v1347_v36 = vsel %vm81_vm9, %v3014_v34, %v3065_v44 }
 0x66d   :  { %v1612_v32 = vsel %vm384_vm3, %v1494_v35, %v1592_v0  ;;  %v1615_v8 = vsel %vm384_vm3, %v1497_v1, %v1595_v12  ;;  %v1607_v54 = vsel %vm384_vm3, %v1416_v19, %v1571_v4  ;;  %v1568_v15 = vrot.slane %v1440_v30, 4 }
 0x66e   :  { %1647 = vmatpush.msra.mxu2 %v1612_v32  ;;  %1707 = vmatpush.msrb.mxu1 %v1615_v8  ;;  %v1569_v26 = vrot.slane %v1441_v27, 4  ;;  %v1556_v33 = vrot.slane %v1386_v58, 4  ;;  %v1359_v31 = vmul.f32 %v2745_v41, %v1347_v36 }
 0x670   :  { %1648 = vmatpush.msra.mxu2 %v1608_v22  ;;  %1708 = vmatpush.msrb.mxu1 %v1611_v11  ;;  %v1393_v38 = vpop.permute.xlu1 %1392 }
 0x671   :  { %v1399_v50 = vsel %vm146_vm7, %v1393_v38, %v1395_v7  ;;  %v1391_v9 = vpop.permute.xlu0 %1390 }
 0x672   :  { %v1415_v49 = vmul.f32 %v2785_v59, %v1399_v50  ;;  %v1400_v60 = vsel %vm146_vm7, %v1391_v9, %v1393_v38  ;;  %v1401_v17 = vsel %vm146_vm7, %v3009_v57, %v1391_v9  ;;  %1709 = vmatpush.msrb.mxu1 %v1607_v54  ;;  %v1600_v57 = vsel %vm384_vm3, %v1359_v31, %v1556_v33 }
 0x673   :  { %v1413_v21 = vmul.f32 %v2781_v23, %v1401_v17  ;;  %v1414_v61 = vmul.f32 %v2783_v6, %v1400_v60  ;;  %v1855_v23 = vld [vmem:[%s3197_s1 + $0x10] sm:$0xf]  ;;  %v1387_v6 = vmul.f32 %v2764_v37, %v1373_v13 }
 0x674   :  { %v1606_v59 = vsel %vm384_vm3, %v1415_v49, %v1570_v53 }
 0x675   :  { %v1604_v2 = vsel %vm384_vm3, %v1413_v21, %v1568_v15  ;;  %v1605_v40 = vsel %vm384_vm3, %v1414_v61, %v1569_v26  ;;  %1689 = vmatpush.msrb.mxu0 %v1606_v59  ;;  %v1557_v45 = vrot.slane %v1387_v6, 4 }
 0x676   :  { %1649 = vmatpush.msra.mxu2 %v1604_v2  ;;  %1669 = vmatpush.msra.mxu3 %v1605_v40 }
 0x678   :  { %1650 = vmatpush.msra.mxu2 %v1600_v57  ;;  %v1368_v63 = vpop.permute.xlu1 %1367 }
 0x679   :  { %v1339_v18 = vpop.permute.xlu0 %1338  ;;  %1857 = vmatmul.msk.f32.vlgmr.msra.gmra.mxu2 %vm405_vm10, %v1855_v23  ;;  %v1371_v7 = vsel %vm113_vm8, %v1368_v63, %v3020_v46  ;;  %v1372_v37 = vsel %vm113_vm8, %v3058_v52, %v1368_v63 }
 0x67a   :  { %v1346_v41 = vsel %vm81_vm9, %v3065_v44, %v1339_v18  ;;  %v1388_v51 = vmul.f32 %v2766_v48, %v1372_v37  ;;  %v1389_v0 = vmul.f32 %v2768_v5, %v1371_v7 }
 0x67b   :  { %v1360_v47 = vmul.f32 %v2747_v25, %v1346_v41 }
 0x67c   :  { %v1558_v12 = vrot.slane %v1388_v51, 4  ;;  %v1559_v14 = vrot.slane %v1389_v0, 4 }
 0x67d   :  { %v1601_v3 = vsel %vm384_vm3, %v1360_v47, %v1557_v45 }
 0x67e   :  { %1670 = vmatpush.msra.mxu3 %v1601_v3 }
 0x67f   :  { %1859 = vmatmul.msk.f32.vlgmr.msra.gmra.mxu3 %vm405_vm10, %v1855_v23 }
 0x681   :  { %v1341_v44 = vpop.permute.xlu0 %1340 }
 0x682   :  { %v1344_v25 = vsel %vm81_vm9, %v1341_v44, %v3014_v34  ;;  %v1345_v46 = vsel %vm81_vm9, %v1339_v18, %v1341_v44 }
 0x683   :  { %v1361_v52 = vmul.f32 %v2750_v28, %v1345_v46  ;;  %v1362_v43 = vmul.f32 %v2752_v29, %v1344_v25 }
 0x685   :  { %v1602_v48 = vsel %vm384_vm3, %v1361_v52, %v1558_v12  ;;  %v1603_v5 = vsel %vm384_vm3, %v1362_v43, %v1559_v14 }
 0x686   :  { %1690 = vmatpush.msrb.mxu0 %v1602_v48  ;;  %1710 = vmatpush.msrb.mxu1 %v1603_v5 }
 0x687   :  { %1861 = vmatmul.msk.f32.vlgmr.msrb.gmra.mxu0 %vm405_vm10, %v1855_v23  ;;  %1863 = vmatmul.msk.f32.vlgmr.msrb.gmra.mxu1 %vm405_vm10, %v1855_v23 }
 0x6fc   :  { %v1652_v34 = vpop.f32.mrf.mxu2 }
 0x6fd   :  { %v1864_v24 = vmul.f32 -1.442695, %v1652_v34 }
 0x6ff   :  { %1888 = vpow2.f32 %v1864_v24 }
 0x702   :  { %v1672_v55 = vpop.f32.mrf.mxu3 }
 0x703   :  { %v1865_v16 = vmul.f32 -1.442695, %v1672_v55 }
 0x704   :  { %v1692_v10 = vpop.f32.mrf.mxu0  ;;  %v1712_v39 = vpop.f32.mrf.mxu1 }
 0x705   :  { %v1889_v28 = vpop.eup %1888  ;;  %1890 = vpow2.f32 %v1865_v16  ;;  %v1866_v29 = vmul.f32 -1.442695, %v1692_v10  ;;  %v1867_v62 = vmul.f32 -1.442695, %v1712_v39 }
 0x706   :  { %v1727_v35 = vadd.f32 1.0, %v1889_v28 }
 0x707   :  { %1892 = vpow2.f32 %v1866_v29 }
 0x708   :  { %1894 = vrcp.f32 %v1727_v35  ;;  %v1740_v11 = vand.u32 2147483647, %v1727_v35  ;;  %v1742_v38 = vand.u32 2147483648, %v1727_v35  ;;  %vm1736_vm11 = vweird.f32 %v1727_v35 }
 0x709   :  { %1896 = vpow2.f32 %v1867_v62 }
 0x70a   :  { %vm3170_vm14 = vcmp.eq.f32.partialorder %v1740_v11, 8.507059e+37  ;;  %v1743_v33 = vor.u32 1.1754944e-38, %v1742_v38 }
 0x70b   :  { %v1891_v1 = vpop.eup %1890 }
 0x70c   :  { %v1728_v56 = vadd.f32 1.0, %v1891_v1 }
 0x70d   :  { %v1893_v42 = vpop.eup %1892 }
 0x70e   :  { %v1895_v20 = vpop.eup %1894  ;;  %1898 = vrcp.f32 %v1728_v56  ;;  %v1729_v8 = vadd.f32 1.0, %v1893_v42  ;;  %v1755_v50 = vand.u32 2147483647, %v1728_v56  ;;  %v1757_v9 = vand.u32 2147483648, %v1728_v56 }
 0x70f   :  { %v1897_v19 = vpop.eup %1896  ;;  %v1732_v32 = vmul.f32 %v1895_v20, %v1727_v35  ;;  %vm1737_vm12 = vweird.f32 %v1895_v20  ;;  %vm1751_vm15 = vweird.f32 %v1728_v56 }
 0x710   :  { %v1730_v4 = vadd.f32 1.0, %v1897_v19  ;;  %1900 = vrcp.f32 %v1729_v8  ;;  %vm3174_vm0 = vmor %vm1736_vm11, %vm1737_vm12  ;;  %vm1756_vm1 = vcmp.eq.f32.partialorder %v1755_v50, 8.507059e+37  ;;  %v1758_v59 = vor.u32 1.1754944e-38, %v1757_v9 }
 0x711   :  { %v1733_v30 = vsub.f32 1.0, %v1732_v32  ;;  %vm1766_vm6 = vweird.f32 %v1729_v8  ;;  %v1772_v45 = vand.u32 2147483648, %v1729_v8  ;;  %v1770_v37 = vand.u32 2147483647, %v1729_v8 }
 0x712   :  { %1902 = vrcp.f32 %v1730_v4  ;;  %v1785_v40 = vand.u32 2147483647, %v1730_v4  ;;  %v1787_v23 = vand.u32 2147483648, %v1730_v4  ;;  %vm1781_vm8 = vweird.f32 %v1730_v4 }
 0x713   :  { %v1734_v58 = vmul.f32 %v1895_v20, %v1733_v30  ;;  %v1773_v12 = vor.u32 1.1754944e-38, %v1772_v45  ;;  %vm1771_vm11 = vcmp.eq.f32.partialorder %v1770_v37, 8.507059e+37 }
 0x714   :  { %v1899_v27 = vpop.eup %1898  ;;  %v1788_v0 = vor.u32 1.1754944e-38, %v1787_v23  ;;  %vm1786_vm10 = vcmp.eq.f32.partialorder %v1785_v40, 8.507059e+37 }
 0x715   :  { %v1747_v22 = vmul.f32 %v1899_v27, %v1728_v56  ;;  %v1735_v49 = vadd.f32 %v1895_v20, %v1734_v58  ;;  %vm1752_vm13 = vweird.f32 %v1899_v27 }
 0x716   :  { %v1901_v53 = vpop.eup %1900  ;;  %vm1753_vm2 = vmor %vm1751_vm15, %vm1752_vm13 }
 0x717   :  { %v1748_v36 = vsub.f32 1.0, %v1747_v22  ;;  %v1762_v15 = vmul.f32 %v1901_v53, %v1729_v8  ;;  %vm1767_vm4 = vweird.f32 %v1901_v53  ;;  %v1739_v6 = vsel %vm3174_vm0, %v1895_v20, %v1735_v49 }
 0x718   :  { %v1903_v54 = vpop.eup %1902  ;;  %vm3180_vm7 = vmor %vm1766_vm6, %vm1767_vm4  ;;  %v1744_v51 = vsel %vm3170_vm14, %v1743_v33, %v1739_v6 }
 0x719   :  { %v1749_v60 = vmul.f32 %v1899_v27, %v1748_v36  ;;  %v1777_v17 = vmul.f32 %v1903_v54, %v1730_v4  ;;  %v1763_v21 = vsub.f32 1.0, %v1762_v15  ;;  %vm1782_vm5 = vweird.f32 %v1903_v54 }
 0x71a   :  { %vm1783_vm9 = vmor %vm1781_vm8, %vm1782_vm5 }
 0x71b   :  { %v1750_v13 = vadd.f32 %v1899_v27, %v1749_v60  ;;  %v1778_v31 = vsub.f32 1.0, %v1777_v17  ;;  %v1764_v2 = vmul.f32 %v1901_v53, %v1763_v21 }
 0x71d   :  { %v1754_v57 = vsel %vm1753_vm2, %v1899_v27, %v1750_v13  ;;  %v1779_v63 = vmul.f32 %v1903_v54, %v1778_v31  ;;  %v1765_v41 = vadd.f32 %v1901_v53, %v1764_v2 }
 0x71e   :  { %v1759_v18 = vsel %vm1756_vm1, %v1758_v59, %v1754_v57 }
 0x71f   :  { %v1793_v47 = vrot.slane %v1759_v18, 4  ;;  %v1780_v3 = vadd.f32 %v1903_v54, %v1779_v63  ;;  %v1769_v25 = vsel %vm3180_vm7, %v1901_v53, %v1765_v41 }
 0x720   :  { %v1774_v43 = vsel %vm1771_vm11, %v1773_v12, %v1769_v25 }
 0x721   :  { %v1794_v44 = vsel %vm384_vm3, %v1744_v51, %v1793_v47  ;;  %v1784_v46 = vsel %vm1783_vm9, %v1903_v54, %v1780_v3 }
 0x722   :  { %1796 = vst [vmem:[%s3202_s6] sm:$0xff] %v1794_v44  ;;  %v1789_v14 = vsel %vm1786_vm10, %v1788_v0, %v1784_v46 }
 0x723   :  { %v1799_v52 = vrot.slane %v1789_v14, 4 }
 0x725   :  { %v1800_v48 = vsel %vm384_vm3, %v1774_v43, %v1799_v52 }
 0x726   :  { %1868 = vst [vmem:[%s3202_s6 + $0x8] sm:$0xff] %v1800_v48 }
 0x727   :  { %1808 = vsyncpa [#allocation3], 1 }
 0x728   :  { %1809 = vsyncpa [#allocation5], 1 }

</bundles_post_ra>
